<compile_context>
chip_gen: v7x
topology: tpu7x:2x2x1
jax: 0.10.0
libtpu: 0.0.40
codegen_flags: <defaults>
</compile_context>

<pallas_src>
import jax
import jax.numpy as jnp
from jax.experimental import pallas as pl
from jax.experimental.pallas import tpu as pltpu

EPS = 1e-5
LANE = 128
IN_DIM = 256
# (in_features, out_features) for each Linear in the PyTorch stack.
LAYER_DIMS = [(256, 128), (128, 128), (128, 96), (96, 96), (96, 96), (96, 96)]
N_LAYERS = len(LAYER_DIMS)


def _pad_up(n, m):
    return ((n + m - 1) // m) * m


PADDED_DIMS = [(_pad_up(fi, LANE), _pad_up(fo, LANE)) for fi, fo in LAYER_DIMS]
W_ROW_OFFSETS = []
_off = 0
for _fin_p, _fout_p in PADDED_DIMS:
    W_ROW_OFFSETS.append(_off)
    _off += _fin_p
W_TOTAL_ROWS = _off                        # 256 + 5*128 = 896
OUT_DIM = LAYER_DIMS[-1][1]                # 96
OUT_DIM_PADDED = PADDED_DIMS[-1][1]        # 128
GB_ROWS = _pad_up(2 * N_LAYERS, 8)         # 16 (sublane aligned)


def movie_name_kernel(x_ref, w_ref, gb_ref, o_ref):
    """One independent batch group per grid step; whole 6-layer stack VMEM-resident.

    x_ref:  (B, 256)   matmul dtype (bf16 recommended on v5e/v6e/v7x)
    w_ref:  (896, 128) matmul dtype; layer li's (fin_p, 128) weight block starts
                       at row W_ROW_OFFSETS[li].  Constant index_map -> fetched
                       once, resident across all grid steps.
    gb_ref: (16, 128)  f32; row 2*li = padded gamma, row 2*li+1 = padded beta.
    o_ref:  (B, 128)   f32, lane-dense; caller slices to 96.
    """
    b_rows = x_ref.shape[0]
    inv_b = 1.0 / b_rows
    h_mm = x_ref[...]                                  # already the matmul dtype
    h = None
    for li, (fin_p, _fout_p) in enumerate(PADDED_DIMS):
        r0 = W_ROW_OFFSETS[li]
        w = w_ref[r0:r0 + fin_p, :]                    # static slice (free)
        # Linear (bias dropped: cancelled exactly by BN batch-mean subtraction).
        h = jnp.dot(h_mm, w, preferred_element_type=jnp.float32)

        # Training-mode BatchNorm1d, fused: two back-to-back row reductions
        # (sum, sum-of-squares), then a single FMA pass.  Stats math stays f32.
        s1 = jnp.sum(h, axis=0, keepdims=True)
        s2 = jnp.sum(h * h, axis=0, keepdims=True)
        mean = s1 * inv_b
        var = jnp.maximum(s2 * inv_b - mean * mean, 0.0)   # biased var; clamped
        gamma = gb_ref[2 * li:2 * li + 1, :]               # (1, 128)
        beta = gb_ref[2 * li + 1:2 * li + 2, :]            # (1, 128)
        scale = gamma * jax.lax.rsqrt(var + EPS)           # rides the EUP slot
        shift = beta - mean * scale
        # scale/shift are data-dependent (1,128) rows, so the (1,128)->(B,128)
        # broadcast in this FMA is unavoidable; gamma/beta stay single rows.
        h = h * scale + shift

        if li < N_LAYERS - 1:
            h = jnp.maximum(h, 0.0)                        # ReLU
            h_mm = h.astype(w_ref.dtype)                   # next matmul operand
        else:
            h = jax.nn.sigmoid(h)                          # final Sigmoid
    o_ref[...] = h.astype(o_ref.dtype)


def init_params(key):
    """Deterministic init matching the PyTorch module's parameter shapes."""
    params = []
    for fin, fout in LAYER_DIMS:
        key, kw, kb = jax.random.split(key, 3)
        bound = 1.0 / float(fin) ** 0.5
        # PyTorch Linear convention: weight is (out, in).
        w = jax.random.uniform(kw, (fout, fin), jnp.float32, -bound, bound)
        b = jax.random.uniform(kb, (fout,), jnp.float32, -bound, bound)
        gamma = jnp.ones((fout,), jnp.float32)             # BN weight init
        beta = jnp.zeros((fout,), jnp.float32)             # BN bias init
        params.append((w, b, gamma, beta))
    return params


def pack_params(params, weight_dtype=jnp.bfloat16):
    """One-time packing: transpose, zero-pad to 128 lanes, concat, cast.

    bf16 weights are recommended on ALL chips (v5e/v6e/v7x): the MXU is natively
    bf16 everywhere and the weight-slab DMA is the dominant per-call HBM traffic,
    so halving it helps most on v5e's lower HBM bandwidth.  BN/activation math
    stays f32 regardless.  Use weight_dtype=jnp.float32 for exact f32 semantics.

    Linear biases are intentionally not packed: training-mode BN removes any
    per-feature constant, so they have no effect on the forward output.
    """
    w_blocks = []
    gb = jnp.zeros((GB_ROWS, LANE), jnp.float32)
    for li, ((fin, fout), (fin_p, fout_p), (w, _b, gamma, beta)) in enumerate(
            zip(LAYER_DIMS, PADDED_DIMS, params)):
        wt = jnp.zeros((fin_p, fout_p), jnp.float32).at[:fin, :fout].set(w.T)
        w_blocks.append(wt)
        gb = gb.at[2 * li, :fout].set(gamma)
        gb = gb.at[2 * li + 1, :fout].set(beta)
    w_slab = jnp.concatenate(w_blocks, axis=0).astype(weight_dtype)   # (896, 128)
    return w_slab, gb                                                 # gb: (16, 128) f32


def _pallas_forward(x_flat, w_slab, gb_slab, group_size):
    """x_flat: (num_groups*group_size, 256) in the matmul dtype."""
    total_rows = x_flat.shape[0]
    num_groups = total_rows // group_size
    assert num_groups * group_size == total_rows
    if num_groups > 1:
        assert group_size % 8 == 0, "per-group rows must be a multiple of 8 when G > 1"

    # Advisory cost estimate so XLA can overlap this call with neighboring ops
    # (review item: hide the weight-slab DMA when the forward is not batched).
    flops = 2 * total_rows * sum(fi * fo for fi, fo in PADDED_DIMS)
    transcendentals = num_groups * N_LAYERS * LANE + total_rows * LANE
    bytes_accessed = (x_flat.size * x_flat.dtype.itemsize
                      + w_slab.size * w_slab.dtype.itemsize
                      + gb_slab.size * gb_slab.dtype.itemsize
                      + total_rows * OUT_DIM_PADDED * 4)

    return pl.pallas_call(
        movie_name_kernel,
        out_shape=jax.ShapeDtypeStruct((total_rows, OUT_DIM_PADDED), jnp.float32),
        grid=(num_groups,),
        in_specs=[
            # Only the x tile streams per grid step.
            pl.BlockSpec((group_size, IN_DIM), lambda g: (g, 0)),
            # Constant block index -> weight slab DMA'd once, VMEM-resident.
            pl.BlockSpec((W_TOTAL_ROWS, LANE), lambda g: (0, 0)),
            pl.BlockSpec((GB_ROWS, LANE), lambda g: (0, 0)),
        ],
        out_specs=pl.BlockSpec((group_size, OUT_DIM_PADDED), lambda g: (g, 0)),
        compiler_params=pltpu.CompilerParams(
            # Each grid step is an independent batch group -> safe to shard
            # across v7x's two TensorCores.
            dimension_semantics=("parallel",)),
        cost_estimate=pl.CostEstimate(flops=flops,
                                      transcendentals=transcendentals,
                                      bytes_accessed=bytes_accessed),
    )(x_flat, w_slab, gb_slab)


@jax.jit
def movie_name_forward(x, w_slab, gb_slab):
    """Exact module semantics: one batch, BN statistics over all rows of x."""
    out = _pallas_forward(x.astype(w_slab.dtype), w_slab, gb_slab,
                          group_size=x.shape[0])
    return out[:, :OUT_DIM]


@jax.jit
def movie_name_forward_groups(x_groups, w_slab, gb_slab):
    """G independent batches in one call: (G, B, 256) -> (G, B, 96).

    Numerically equivalent to calling the module once per group (each grid step
    computes its own BN batch statistics), but launch overhead and the weight
    DMA are paid once, weights stay VMEM-resident across grid steps, and the
    group axis is parallel so v7x uses both TensorCores.
    """
    G, B, D = x_groups.shape
    x_flat = x_groups.reshape(G * B, D).astype(w_slab.dtype)
    out = _pallas_forward(x_flat, w_slab, gb_slab, group_size=B)
    return out.reshape(G, B, OUT_DIM_PADDED)[..., :OUT_DIM]


def reference_forward(x, params, matmul_dtype=jnp.float32):
    """Pure-JAX reference with the original module's semantics (biases kept).

    matmul_dtype=bfloat16 mirrors the kernel's bf16 MXU operands for a
    precision-matched comparison; float32 is the exact module math.
    """
    h = x.astype(jnp.float32)
    for li, (w, b, gamma, beta) in enumerate(params):
        h = jnp.dot(h.astype(matmul_dtype), w.T.astype(matmul_dtype),
                    preferred_element_type=jnp.float32) + b
        mean = jnp.mean(h, axis=0, keepdims=True)
        var = jnp.mean((h - mean) ** 2, axis=0, keepdims=True)
        h = gamma * (h - mean) / jnp.sqrt(var + EPS) + beta
        h = jnp.maximum(h, 0.0) if li < N_LAYERS - 1 else jax.nn.sigmoid(h)
    return h


if __name__ == "__main__":
    key = jax.random.PRNGKey(0)
    kx1, kx2, kp = jax.random.split(key, 3)

    params = init_params(kp)

    B = 128   # per-group batch: >=128 rows keeps the MXU fill/drain amortized
    G = 4     # independent batch groups sharing one pallas_call / one weight DMA

    # --- exact-f32 single-batch path: proves the bias-drop / padding / fused-BN
    #     rewrites are numerically faithful to the original module semantics.
    x = jax.random.normal(kx1, (B, IN_DIM), jnp.float32)
    w32, gb32 = pack_params(params, weight_dtype=jnp.float32)
    out32 = jax.block_until_ready(movie_name_forward(x, w32, gb32))
    ref32 = reference_forward(x, params, jnp.float32)
    assert out32.shape == (B, OUT_DIM)
    assert bool(jnp.all(jnp.isfinite(out32)))
    err32 = float(jnp.max(jnp.abs(out32 - ref32)))
    assert err32 < 5e-4, f"f32 mismatch vs reference: {err32}"

    # --- default bf16-weight path, batched over G independent groups with the
    #     grid (weights VMEM-resident across steps, group axis parallel).
    wbf, gbbf = pack_params(params)                        # bf16 default, all chips
    x_groups = jax.random.normal(kx2, (G, B, IN_DIM), jnp.float32)
    out_g = jax.block_until_ready(movie_name_forward_groups(x_groups, wbf, gbbf))
    assert out_g.shape == (G, B, OUT_DIM)
    assert bool(jnp.all(jnp.isfinite(out_g)))
    for g in range(G):
        ref_bf = reference_forward(x_groups[g], params, jnp.bfloat16)
        err_bf = float(jnp.max(jnp.abs(out_g[g] - ref_bf)))
        assert err_bf < 5e-3, f"group {g}: bf16 mismatch vs matched reference: {err_bf}"
        ref_f32 = reference_forward(x_groups[g], params, jnp.float32)
        err_drift = float(jnp.max(jnp.abs(out_g[g] - ref_f32)))
        assert err_drift < 5e-2, f"group {g}: bf16 drifted from f32 semantics: {err_drift}"

    # TODO(synk): PyTorch training-mode BN also updates running_mean/var buffers
    # as a side effect; those buffers do not affect the forward output and are
    # not materialized here.

    print("KERNEL_OK")
</pallas_src>

<mosaic_0001>
module attributes {stable_mosaic.version = 11 : i64} {
  func.func @movie_name_kernel(%arg0: i32, %arg1: memref<128x256xf32, #tpu.memory_space<vmem>>, %arg2: memref<896x128xf32, #tpu.memory_space<vmem>>, %arg3: memref<16x128xf32, #tpu.memory_space<vmem>>, %arg4: memref<128x128xf32, #tpu.memory_space<vmem>>) attributes {dimension_semantics = [#tpu.dimension_semantics<parallel>], iteration_bounds = array<i64: 1>, scalar_prefetch = 0 : i64, scratch_operands = 0 : i64, tpu.core_type = #tpu.core_type<tc>, window_params = [{transform_indices = @transform_0, window_bounds = array<i64: 128, 256>}, {pipeline_mode = #tpu.pipeline_mode<synchronous>, transform_indices = @transform_1, window_bounds = array<i64: 896, 128>}, {pipeline_mode = #tpu.pipeline_mode<synchronous>, transform_indices = @transform_2, window_bounds = array<i64: 16, 128>}, {transform_indices = @transform_3, window_bounds = array<i64: 128, 128>}]} {
    %c0 = arith.constant 0 : index
    %c0_0 = arith.constant 0 : index
    %0 = vector.load %arg1[%c0, %c0_0] : memref<128x256xf32, #tpu.memory_space<vmem>>, vector<128x256xf32>
    %c0_1 = arith.constant 0 : index
    %c0_2 = arith.constant 0 : index
    %1 = vector.load %arg2[%c0_1, %c0_2] : memref<896x128xf32, #tpu.memory_space<vmem>>, vector<256x128xf32>
    %cst = arith.constant dense<0.000000e+00> : vector<128x128xf32>
    %2 = tpu.matmul %0, %1, %cst {dimension_numbers = #tpu.dot_dimension_numbers<[1], [0], [0], [1], [0, 0, 1, 1], [], []>} : vector<128x256xf32>, vector<256x128xf32>, vector<128x128xf32> -> vector<128x128xf32>
    %cst_3 = arith.constant dense<0.000000e+00> : vector<128xf32>
    %3 = vector.multi_reduction <add>, %2, %cst_3 [0] : vector<128x128xf32> to vector<128xf32>
    %4 = vector.shape_cast %3 : vector<128xf32> to vector<1x128xf32>
    %5 = arith.mulf %2, %2 : vector<128x128xf32>
    %cst_4 = arith.constant dense<0.000000e+00> : vector<128xf32>
    %6 = vector.multi_reduction <add>, %5, %cst_4 [0] : vector<128x128xf32> to vector<128xf32>
    %7 = vector.shape_cast %6 : vector<128xf32> to vector<1x128xf32>
    %cst_5 = arith.constant 7.812500e-03 : f32
    %8 = vector.broadcast %cst_5 : f32 to vector<1x128xf32>
    %9 = arith.mulf %4, %8 : vector<1x128xf32>
    %cst_6 = arith.constant 7.812500e-03 : f32
    %10 = vector.broadcast %cst_6 : f32 to vector<1x128xf32>
    %11 = arith.mulf %7, %10 : vector<1x128xf32>
    %12 = arith.mulf %9, %9 : vector<1x128xf32>
    %13 = arith.subf %11, %12 : vector<1x128xf32>
    %cst_7 = arith.constant 0.000000e+00 : f32
    %14 = vector.broadcast %cst_7 : f32 to vector<1x128xf32>
    %15 = arith.maximumf %13, %14 : vector<1x128xf32>
    %c0_8 = arith.constant 0 : index
    %c0_9 = arith.constant 0 : index
    %16 = vector.load %arg3[%c0_8, %c0_9] : memref<16x128xf32, #tpu.memory_space<vmem>>, vector<1x128xf32>
    %c1 = arith.constant 1 : index
    %c0_10 = arith.constant 0 : index
    %17 = vector.load %arg3[%c1, %c0_10] : memref<16x128xf32, #tpu.memory_space<vmem>>, vector<1x128xf32>
    %cst_11 = arith.constant 9.99999974E-6 : f32
    %18 = vector.broadcast %cst_11 : f32 to vector<1x128xf32>
    %19 = arith.addf %15, %18 : vector<1x128xf32>
    %20 = math.rsqrt %19 : vector<1x128xf32>
    %21 = arith.mulf %16, %20 : vector<1x128xf32>
    %22 = arith.mulf %9, %21 : vector<1x128xf32>
    %23 = arith.subf %17, %22 : vector<1x128xf32>
    %24 = vector.broadcast %21 : vector<1x128xf32> to vector<128x128xf32>
    %25 = arith.mulf %2, %24 : vector<128x128xf32>
    %26 = vector.broadcast %23 : vector<1x128xf32> to vector<128x128xf32>
    %27 = arith.addf %25, %26 : vector<128x128xf32>
    %cst_12 = arith.constant 0.000000e+00 : f32
    %28 = vector.broadcast %cst_12 : f32 to vector<128x128xf32>
    %29 = arith.maximumf %27, %28 : vector<128x128xf32>
    %c256 = arith.constant 256 : index
    %c0_13 = arith.constant 0 : index
    %30 = vector.load %arg2[%c256, %c0_13] : memref<896x128xf32, #tpu.memory_space<vmem>>, vector<128x128xf32>
    %cst_14 = arith.constant dense<0.000000e+00> : vector<128x128xf32>
    %31 = tpu.matmul %29, %30, %cst_14 {dimension_numbers = #tpu.dot_dimension_numbers<[1], [0], [0], [1], [0, 0, 1, 1], [], []>} : vector<128x128xf32>, vector<128x128xf32>, vector<128x128xf32> -> vector<128x128xf32>
    %cst_15 = arith.constant dense<0.000000e+00> : vector<128xf32>
    %32 = vector.multi_reduction <add>, %31, %cst_15 [0] : vector<128x128xf32> to vector<128xf32>
    %33 = vector.shape_cast %32 : vector<128xf32> to vector<1x128xf32>
    %34 = arith.mulf %31, %31 : vector<128x128xf32>
    %cst_16 = arith.constant dense<0.000000e+00> : vector<128xf32>
    %35 = vector.multi_reduction <add>, %34, %cst_16 [0] : vector<128x128xf32> to vector<128xf32>
    %36 = vector.shape_cast %35 : vector<128xf32> to vector<1x128xf32>
    %cst_17 = arith.constant 7.812500e-03 : f32
    %37 = vector.broadcast %cst_17 : f32 to vector<1x128xf32>
    %38 = arith.mulf %33, %37 : vector<1x128xf32>
    %cst_18 = arith.constant 7.812500e-03 : f32
    %39 = vector.broadcast %cst_18 : f32 to vector<1x128xf32>
    %40 = arith.mulf %36, %39 : vector<1x128xf32>
    %41 = arith.mulf %38, %38 : vector<1x128xf32>
    %42 = arith.subf %40, %41 : vector<1x128xf32>
    %cst_19 = arith.constant 0.000000e+00 : f32
    %43 = vector.broadcast %cst_19 : f32 to vector<1x128xf32>
    %44 = arith.maximumf %42, %43 : vector<1x128xf32>
    %c2 = arith.constant 2 : index
    %c0_20 = arith.constant 0 : index
    %45 = vector.load %arg3[%c2, %c0_20] : memref<16x128xf32, #tpu.memory_space<vmem>>, vector<1x128xf32>
    %c3 = arith.constant 3 : index
    %c0_21 = arith.constant 0 : index
    %46 = vector.load %arg3[%c3, %c0_21] : memref<16x128xf32, #tpu.memory_space<vmem>>, vector<1x128xf32>
    %cst_22 = arith.constant 9.99999974E-6 : f32
    %47 = vector.broadcast %cst_22 : f32 to vector<1x128xf32>
    %48 = arith.addf %44, %47 : vector<1x128xf32>
    %49 = math.rsqrt %48 : vector<1x128xf32>
    %50 = arith.mulf %45, %49 : vector<1x128xf32>
    %51 = arith.mulf %38, %50 : vector<1x128xf32>
    %52 = arith.subf %46, %51 : vector<1x128xf32>
    %53 = vector.broadcast %50 : vector<1x128xf32> to vector<128x128xf32>
    %54 = arith.mulf %31, %53 : vector<128x128xf32>
    %55 = vector.broadcast %52 : vector<1x128xf32> to vector<128x128xf32>
    %56 = arith.addf %54, %55 : vector<128x128xf32>
    %cst_23 = arith.constant 0.000000e+00 : f32
    %57 = vector.broadcast %cst_23 : f32 to vector<128x128xf32>
    %58 = arith.maximumf %56, %57 : vector<128x128xf32>
    %c384 = arith.constant 384 : index
    %c0_24 = arith.constant 0 : index
    %59 = vector.load %arg2[%c384, %c0_24] : memref<896x128xf32, #tpu.memory_space<vmem>>, vector<128x128xf32>
    %cst_25 = arith.constant dense<0.000000e+00> : vector<128x128xf32>
    %60 = tpu.matmul %58, %59, %cst_25 {dimension_numbers = #tpu.dot_dimension_numbers<[1], [0], [0], [1], [0, 0, 1, 1], [], []>} : vector<128x128xf32>, vector<128x128xf32>, vector<128x128xf32> -> vector<128x128xf32>
    %cst_26 = arith.constant dense<0.000000e+00> : vector<128xf32>
    %61 = vector.multi_reduction <add>, %60, %cst_26 [0] : vector<128x128xf32> to vector<128xf32>
    %62 = vector.shape_cast %61 : vector<128xf32> to vector<1x128xf32>
    %63 = arith.mulf %60, %60 : vector<128x128xf32>
    %cst_27 = arith.constant dense<0.000000e+00> : vector<128xf32>
    %64 = vector.multi_reduction <add>, %63, %cst_27 [0] : vector<128x128xf32> to vector<128xf32>
    %65 = vector.shape_cast %64 : vector<128xf32> to vector<1x128xf32>
    %cst_28 = arith.constant 7.812500e-03 : f32
    %66 = vector.broadcast %cst_28 : f32 to vector<1x128xf32>
    %67 = arith.mulf %62, %66 : vector<1x128xf32>
    %cst_29 = arith.constant 7.812500e-03 : f32
    %68 = vector.broadcast %cst_29 : f32 to vector<1x128xf32>
    %69 = arith.mulf %65, %68 : vector<1x128xf32>
    %70 = arith.mulf %67, %67 : vector<1x128xf32>
    %71 = arith.subf %69, %70 : vector<1x128xf32>
    %cst_30 = arith.constant 0.000000e+00 : f32
    %72 = vector.broadcast %cst_30 : f32 to vector<1x128xf32>
    %73 = arith.maximumf %71, %72 : vector<1x128xf32>
    %c4 = arith.constant 4 : index
    %c0_31 = arith.constant 0 : index
    %74 = vector.load %arg3[%c4, %c0_31] : memref<16x128xf32, #tpu.memory_space<vmem>>, vector<1x128xf32>
    %c5 = arith.constant 5 : index
    %c0_32 = arith.constant 0 : index
    %75 = vector.load %arg3[%c5, %c0_32] : memref<16x128xf32, #tpu.memory_space<vmem>>, vector<1x128xf32>
    %cst_33 = arith.constant 9.99999974E-6 : f32
    %76 = vector.broadcast %cst_33 : f32 to vector<1x128xf32>
    %77 = arith.addf %73, %76 : vector<1x128xf32>
    %78 = math.rsqrt %77 : vector<1x128xf32>
    %79 = arith.mulf %74, %78 : vector<1x128xf32>
    %80 = arith.mulf %67, %79 : vector<1x128xf32>
    %81 = arith.subf %75, %80 : vector<1x128xf32>
    %82 = vector.broadcast %79 : vector<1x128xf32> to vector<128x128xf32>
    %83 = arith.mulf %60, %82 : vector<128x128xf32>
    %84 = vector.broadcast %81 : vector<1x128xf32> to vector<128x128xf32>
    %85 = arith.addf %83, %84 : vector<128x128xf32>
    %cst_34 = arith.constant 0.000000e+00 : f32
    %86 = vector.broadcast %cst_34 : f32 to vector<128x128xf32>
    %87 = arith.maximumf %85, %86 : vector<128x128xf32>
    %c512 = arith.constant 512 : index
    %c0_35 = arith.constant 0 : index
    %88 = vector.load %arg2[%c512, %c0_35] : memref<896x128xf32, #tpu.memory_space<vmem>>, vector<128x128xf32>
    %cst_36 = arith.constant dense<0.000000e+00> : vector<128x128xf32>
    %89 = tpu.matmul %87, %88, %cst_36 {dimension_numbers = #tpu.dot_dimension_numbers<[1], [0], [0], [1], [0, 0, 1, 1], [], []>} : vector<128x128xf32>, vector<128x128xf32>, vector<128x128xf32> -> vector<128x128xf32>
    %cst_37 = arith.constant dense<0.000000e+00> : vector<128xf32>
    %90 = vector.multi_reduction <add>, %89, %cst_37 [0] : vector<128x128xf32> to vector<128xf32>
    %91 = vector.shape_cast %90 : vector<128xf32> to vector<1x128xf32>
    %92 = arith.mulf %89, %89 : vector<128x128xf32>
    %cst_38 = arith.constant dense<0.000000e+00> : vector<128xf32>
    %93 = vector.multi_reduction <add>, %92, %cst_38 [0] : vector<128x128xf32> to vector<128xf32>
    %94 = vector.shape_cast %93 : vector<128xf32> to vector<1x128xf32>
    %cst_39 = arith.constant 7.812500e-03 : f32
    %95 = vector.broadcast %cst_39 : f32 to vector<1x128xf32>
    %96 = arith.mulf %91, %95 : vector<1x128xf32>
    %cst_40 = arith.constant 7.812500e-03 : f32
    %97 = vector.broadcast %cst_40 : f32 to vector<1x128xf32>
    %98 = arith.mulf %94, %97 : vector<1x128xf32>
    %99 = arith.mulf %96, %96 : vector<1x128xf32>
    %100 = arith.subf %98, %99 : vector<1x128xf32>
    %cst_41 = arith.constant 0.000000e+00 : f32
    %101 = vector.broadcast %cst_41 : f32 to vector<1x128xf32>
    %102 = arith.maximumf %100, %101 : vector<1x128xf32>
    %c6 = arith.constant 6 : index
    %c0_42 = arith.constant 0 : index
    %103 = vector.load %arg3[%c6, %c0_42] : memref<16x128xf32, #tpu.memory_space<vmem>>, vector<1x128xf32>
    %c7 = arith.constant 7 : index
    %c0_43 = arith.constant 0 : index
    %104 = vector.load %arg3[%c7, %c0_43] : memref<16x128xf32, #tpu.memory_space<vmem>>, vector<1x128xf32>
    %cst_44 = arith.constant 9.99999974E-6 : f32
    %105 = vector.broadcast %cst_44 : f32 to vector<1x128xf32>
    %106 = arith.addf %102, %105 : vector<1x128xf32>
    %107 = math.rsqrt %106 : vector<1x128xf32>
    %108 = arith.mulf %103, %107 : vector<1x128xf32>
    %109 = arith.mulf %96, %108 : vector<1x128xf32>
    %110 = arith.subf %104, %109 : vector<1x128xf32>
    %111 = vector.broadcast %108 : vector<1x128xf32> to vector<128x128xf32>
    %112 = arith.mulf %89, %111 : vector<128x128xf32>
    %113 = vector.broadcast %110 : vector<1x128xf32> to vector<128x128xf32>
    %114 = arith.addf %112, %113 : vector<128x128xf32>
    %cst_45 = arith.constant 0.000000e+00 : f32
    %115 = vector.broadcast %cst_45 : f32 to vector<128x128xf32>
    %116 = arith.maximumf %114, %115 : vector<128x128xf32>
    %c640 = arith.constant 640 : index
    %c0_46 = arith.constant 0 : index
    %117 = vector.load %arg2[%c640, %c0_46] : memref<896x128xf32, #tpu.memory_space<vmem>>, vector<128x128xf32>
    %cst_47 = arith.constant dense<0.000000e+00> : vector<128x128xf32>
    %118 = tpu.matmul %116, %117, %cst_47 {dimension_numbers = #tpu.dot_dimension_numbers<[1], [0], [0], [1], [0, 0, 1, 1], [], []>} : vector<128x128xf32>, vector<128x128xf32>, vector<128x128xf32> -> vector<128x128xf32>
    %cst_48 = arith.constant dense<0.000000e+00> : vector<128xf32>
    %119 = vector.multi_reduction <add>, %118, %cst_48 [0] : vector<128x128xf32> to vector<128xf32>
    %120 = vector.shape_cast %119 : vector<128xf32> to vector<1x128xf32>
    %121 = arith.mulf %118, %118 : vector<128x128xf32>
    %cst_49 = arith.constant dense<0.000000e+00> : vector<128xf32>
    %122 = vector.multi_reduction <add>, %121, %cst_49 [0] : vector<128x128xf32> to vector<128xf32>
    %123 = vector.shape_cast %122 : vector<128xf32> to vector<1x128xf32>
    %cst_50 = arith.constant 7.812500e-03 : f32
    %124 = vector.broadcast %cst_50 : f32 to vector<1x128xf32>
    %125 = arith.mulf %120, %124 : vector<1x128xf32>
    %cst_51 = arith.constant 7.812500e-03 : f32
    %126 = vector.broadcast %cst_51 : f32 to vector<1x128xf32>
    %127 = arith.mulf %123, %126 : vector<1x128xf32>
    %128 = arith.mulf %125, %125 : vector<1x128xf32>
    %129 = arith.subf %127, %128 : vector<1x128xf32>
    %cst_52 = arith.constant 0.000000e+00 : f32
    %130 = vector.broadcast %cst_52 : f32 to vector<1x128xf32>
    %131 = arith.maximumf %129, %130 : vector<1x128xf32>
    %c8 = arith.constant 8 : index
    %c0_53 = arith.constant 0 : index
    %132 = vector.load %arg3[%c8, %c0_53] : memref<16x128xf32, #tpu.memory_space<vmem>>, vector<1x128xf32>
    %c9 = arith.constant 9 : index
    %c0_54 = arith.constant 0 : index
    %133 = vector.load %arg3[%c9, %c0_54] : memref<16x128xf32, #tpu.memory_space<vmem>>, vector<1x128xf32>
    %cst_55 = arith.constant 9.99999974E-6 : f32
    %134 = vector.broadcast %cst_55 : f32 to vector<1x128xf32>
    %135 = arith.addf %131, %134 : vector<1x128xf32>
    %136 = math.rsqrt %135 : vector<1x128xf32>
    %137 = arith.mulf %132, %136 : vector<1x128xf32>
    %138 = arith.mulf %125, %137 : vector<1x128xf32>
    %139 = arith.subf %133, %138 : vector<1x128xf32>
    %140 = vector.broadcast %137 : vector<1x128xf32> to vector<128x128xf32>
    %141 = arith.mulf %118, %140 : vector<128x128xf32>
    %142 = vector.broadcast %139 : vector<1x128xf32> to vector<128x128xf32>
    %143 = arith.addf %141, %142 : vector<128x128xf32>
    %cst_56 = arith.constant 0.000000e+00 : f32
    %144 = vector.broadcast %cst_56 : f32 to vector<128x128xf32>
    %145 = arith.maximumf %143, %144 : vector<128x128xf32>
    %c768 = arith.constant 768 : index
    %c0_57 = arith.constant 0 : index
    %146 = vector.load %arg2[%c768, %c0_57] : memref<896x128xf32, #tpu.memory_space<vmem>>, vector<128x128xf32>
    %cst_58 = arith.constant dense<0.000000e+00> : vector<128x128xf32>
    %147 = tpu.matmul %145, %146, %cst_58 {dimension_numbers = #tpu.dot_dimension_numbers<[1], [0], [0], [1], [0, 0, 1, 1], [], []>} : vector<128x128xf32>, vector<128x128xf32>, vector<128x128xf32> -> vector<128x128xf32>
    %cst_59 = arith.constant dense<0.000000e+00> : vector<128xf32>
    %148 = vector.multi_reduction <add>, %147, %cst_59 [0] : vector<128x128xf32> to vector<128xf32>
    %149 = vector.shape_cast %148 : vector<128xf32> to vector<1x128xf32>
    %150 = arith.mulf %147, %147 : vector<128x128xf32>
    %cst_60 = arith.constant dense<0.000000e+00> : vector<128xf32>
    %151 = vector.multi_reduction <add>, %150, %cst_60 [0] : vector<128x128xf32> to vector<128xf32>
    %152 = vector.shape_cast %151 : vector<128xf32> to vector<1x128xf32>
    %cst_61 = arith.constant 7.812500e-03 : f32
    %153 = vector.broadcast %cst_61 : f32 to vector<1x128xf32>
    %154 = arith.mulf %149, %153 : vector<1x128xf32>
    %cst_62 = arith.constant 7.812500e-03 : f32
    %155 = vector.broadcast %cst_62 : f32 to vector<1x128xf32>
    %156 = arith.mulf %152, %155 : vector<1x128xf32>
    %157 = arith.mulf %154, %154 : vector<1x128xf32>
    %158 = arith.subf %156, %157 : vector<1x128xf32>
    %cst_63 = arith.constant 0.000000e+00 : f32
    %159 = vector.broadcast %cst_63 : f32 to vector<1x128xf32>
    %160 = arith.maximumf %158, %159 : vector<1x128xf32>
    %c10 = arith.constant 10 : index
    %c0_64 = arith.constant 0 : index
    %161 = vector.load %arg3[%c10, %c0_64] : memref<16x128xf32, #tpu.memory_space<vmem>>, vector<1x128xf32>
    %c11 = arith.constant 11 : index
    %c0_65 = arith.constant 0 : index
    %162 = vector.load %arg3[%c11, %c0_65] : memref<16x128xf32, #tpu.memory_space<vmem>>, vector<1x128xf32>
    %cst_66 = arith.constant 9.99999974E-6 : f32
    %163 = vector.broadcast %cst_66 : f32 to vector<1x128xf32>
    %164 = arith.addf %160, %163 : vector<1x128xf32>
    %165 = math.rsqrt %164 : vector<1x128xf32>
    %166 = arith.mulf %161, %165 : vector<1x128xf32>
    %167 = arith.mulf %154, %166 : vector<1x128xf32>
    %168 = arith.subf %162, %167 : vector<1x128xf32>
    %169 = vector.broadcast %166 : vector<1x128xf32> to vector<128x128xf32>
    %170 = arith.mulf %147, %169 : vector<128x128xf32>
    %171 = vector.broadcast %168 : vector<1x128xf32> to vector<128x128xf32>
    %172 = arith.addf %170, %171 : vector<128x128xf32>
    %173 = arith.negf %172 : vector<128x128xf32>
    %174 = math.exp %173 : vector<128x128xf32>
    %cst_67 = arith.constant 1.000000e+00 : f32
    %175 = vector.broadcast %cst_67 : f32 to vector<128x128xf32>
    %176 = arith.addf %175, %174 : vector<128x128xf32>
    %177 = arith.divf %175, %176 : vector<128x128xf32>
    %c0_68 = arith.constant 0 : index
    %c0_69 = arith.constant 0 : index
    %178 = vector.load %arg4[%c0_68, %c0_69] : memref<128x128xf32, #tpu.memory_space<vmem>>, vector<128x128xf32>
    tpu.vector_store %arg4[%c0_68, %c0_69], %177 {strides = array<i32>} : memref<128x128xf32, #tpu.memory_space<vmem>>, vector<128x128xf32>,
    return
  }
  func.func @transform_0(%arg0: i32) -> (i32, i32) {
    %c0_i32 = arith.constant 0 : i32
    %c0_i32_0 = arith.constant 0 : i32
    return %arg0, %c0_i32 : i32, i32
  }
  func.func @transform_1(%arg0: i32) -> (i32, i32) {
    %c0_i32 = arith.constant 0 : i32
    %c0_i32_0 = arith.constant 0 : i32
    %c0_i32_1 = arith.constant 0 : i32
    return %c0_i32, %c0_i32_0 : i32, i32
  }
  func.func @transform_2(%arg0: i32) -> (i32, i32) {
    %c0_i32 = arith.constant 0 : i32
    %c0_i32_0 = arith.constant 0 : i32
    %c0_i32_1 = arith.constant 0 : i32
    return %c0_i32, %c0_i32_0 : i32, i32
  }
  func.func @transform_3(%arg0: i32) -> (i32, i32) {
    %c0_i32 = arith.constant 0 : i32
    %c0_i32_0 = arith.constant 0 : i32
    return %arg0, %c0_i32 : i32, i32
  }
}

</mosaic_0001>

<bundles_post_ra>
// kernel: movie_name_forward.1
= control target key start
LH: loop header
LB: loop body
LE: loop exit
PB: predicated region body
PF: predicated region fallthrough
CT: control target
= control target key end

     0   :  { %8 = vsyncpa [#allocation3], 0  ;;  %s3435_s0 = inlined_call_operand.hbm [shape: f32[128,256], index: 0, kind: input, shape index: {}]   ;;  %s3436_s1 = inlined_call_operand.hbm [shape: f32[896,128], index: 1, kind: input, shape index: {}]   ;;  %s3437_s2 = inlined_call_operand.hbm [shape: f32[16,128], index: 2, kind: input, shape index: {}]   ;;  %s3438_s3 = inlined_call_operand.vmem [shape: f32[128,128], index: 3, kind: output, shape index: {}]  }
   0x1   :  { %9 = vsyncpa [#allocation5], 0  ;;  %s2824_s12 = smov [#allocation4]   ;;  %s2754_s16 = scalar_lea.hbm %s3436_s1, 14336 }
   0x2   :  { %s27_s13 = sshll.u32 %s2824_s12, 4  ;;  %p2755_p0 = scmp.ne.s32.totalorder %s3436_s1, %s2754_s16  ;;  %s28_s13 = int_to_ptr.vmem [resolvable:$true] %s27_s13 }
   0x3   :  { %p2758_p1 = scmp.lt.u32.totalorder %s2754_s16, %s3436_s1 }
   0x5   :  { %p2760_p2 = pnand %p2758_p1, %p2755_p0 }
   0x7   :  { %2763 = shalt.err (!%p2760_p2)
}
   0x8   :  { %s2764_s21 = scalar_lea.vmem %s28_s13, 14336  ;;  %p2769_p4 = scmp.lt.s32.totalorder %s28_s13, %s28_s13 }
   0x9   :  { %p2765_p3 = scmp.ne.s32.totalorder %s28_s13, %s2764_s21  ;;  %p2770_p5 = scmp.lt.s32.totalorder %s2764_s21, %s2764_s21 }
   0xb   :  { %p2771_p6 = por %p2770_p5, %p2769_p4 }
   0xd   :  { %p2772_p7 = pnand %p2771_p6, %p2765_p3 }
   0xf   :  { %2775 = shalt.err (!%p2772_p7)
}
  0x10   :  { %s2825_s22 = smov 128   ;;  %s2826_s23 = smov 8  }
  0x11   :  { %33 = dma.hbm_to_vmem [thread:$0]  %s3436_s1, 14336, %s28_s13, [#allocation5], %s2825_s22, %s2825_s22, %s2826_s23  }
  0x12   :  { %s2827_s26 = smov [#allocation2]   ;;  %s2776_s30 = scalar_lea.hbm %s3435_s0, 4096 }
  0x13   :  { %s15_s27 = sshll.u32 %s2827_s26, 4  ;;  %p2777_p8 = scmp.ne.s32.totalorder %s3435_s0, %s2776_s30  ;;  %s16_s27 = int_to_ptr.vmem [resolvable:$true] %s15_s27 }
  0x14   :  { %p2780_p9 = scmp.lt.u32.totalorder %s2776_s30, %s3435_s0 }
  0x16   :  { %p2782_p10 = pnand %p2780_p9, %p2777_p8 }
  0x18   :  { %2785 = shalt.err (!%p2782_p10)
}
  0x19   :  { %s2786_s8 = scalar_lea.vmem %s16_s27, 4096  ;;  %p2791_p12 = scmp.lt.s32.totalorder %s16_s27, %s16_s27 }
  0x1a   :  { %p2787_p11 = scmp.ne.s32.totalorder %s16_s27, %s2786_s8  ;;  %p2792_p13 = scmp.lt.s32.totalorder %s2786_s8, %s2786_s8 }
  0x1c   :  { %p2793_p0 = por %p2792_p13, %p2791_p12 }
  0x1e   :  { %p2794_p1 = pnand %p2793_p0, %p2787_p11 }
  0x20   :  { %2797 = shalt.err (!%p2794_p1)
}
  0x21   :  { %s2828_s1 = smov 256   ;;  %s2829_s9 = smov 16  }
  0x22   :  { %21 = dma.hbm_to_vmem [thread:$0]  %s3435_s0, 4096, %s16_s27, [#allocation3], %s2828_s1, %s2828_s1, %s2829_s9  }
  0x23   :  { %s2830_s12 = smov [#allocation6]   ;;  %s2798_s16 = scalar_lea.hbm %s3437_s2, 256 }
  0x24   :  { %s39_s13 = sshll.u32 %s2830_s12, 4  ;;  %p2799_p2 = scmp.ne.s32.totalorder %s3437_s2, %s2798_s16  ;;  %s40_s13 = int_to_ptr.vmem [resolvable:$true] %s39_s13 }
  0x25   :  { %p2802_p3 = scmp.lt.u32.totalorder %s2798_s16, %s3437_s2 }
  0x27   :  { %p2804_p4 = pnand %p2802_p3, %p2799_p2 }
  0x29   :  { %2807 = shalt.err (!%p2804_p4)
}
  0x2a   :  { %s2808_s21 = scalar_lea.vmem %s40_s13, 256  ;;  %p2813_p6 = scmp.lt.s32.totalorder %s40_s13, %s40_s13 }
  0x2b   :  { %p2809_p5 = scmp.ne.s32.totalorder %s40_s13, %s2808_s21  ;;  %p2814_p7 = scmp.lt.s32.totalorder %s2808_s21, %s2808_s21 }
  0x2d   :  { %p2815_p8 = por %p2814_p7, %p2813_p6 }
  0x2f   :  { %p2816_p9 = pnand %p2815_p8, %p2809_p5 }
  0x31   :  { %2819 = shalt.err (!%p2816_p9)
}
  0x32   :  { %45 = dma.hbm_to_vmem [thread:$0]  %s3437_s2, 256, %s40_s13, [#allocation5], %s2825_s22, %s2825_s22, %s2826_s23  }
  0x33   :  { %2820 = dma.done.wait [#allocation3], 4096  }
  0x34   :  { %2821 = vsyncadd [#allocation3], 4294963200 }
  0x35   :  { %2822 = dma.done.wait [#allocation5], 14592  }
  0x36   :  { %2823 = vsyncadd [#allocation5], 4294952704  ;;  %v103_v0 = vld [vmem:[#allocation4 + $0x80] sm:$0xff]  ;;  %v104_v1 = vld [vmem:[#allocation4 + $0x88] sm:$0xff] }
  0x37   :  { %v87_v2 = vld [vmem:[#allocation4] sm:$0xff]  ;;  %v2463_v3 = vpack.c.bf16 %v104_v1, %v103_v0  ;;  %v88_v4 = vld [vmem:[#allocation4 + $0x8] sm:$0xff]  ;;  %v105_v5 = vld [vmem:[#allocation4 + $0x90] sm:$0xff] }
  0x38   :  { %v106_v6 = vld [vmem:[#allocation4 + $0x98] sm:$0xff]  ;;  %v2465_v7 = vpack.c.bf16 %v88_v4, %v87_v2  ;;  %v89_v9 = vld [vmem:[#allocation4 + $0x10] sm:$0xff]  ;;  %v107_v11 = vld [vmem:[#allocation4 + $0xa0] sm:$0xff] }
  0x39   :  { %v2467_v8 = vpack.c.bf16 %v106_v6, %v105_v5  ;;  %v90_v10 = vld [vmem:[#allocation4 + $0x18] sm:$0xff]  ;;  %2464 = vmatprep.subr.bf16.mxu0 %v2463_v3  ;;  %v108_v12 = vld [vmem:[#allocation4 + $0xa8] sm:$0xff]  ;;  %v91_v15 = vld [vmem:[#allocation4 + $0x20] sm:$0xff] }
  0x3a   :  { %2466 = vmatpush3.bf16.msra.mxu0 %v2465_v7  ;;  %v2469_v13 = vpack.c.bf16 %v90_v10, %v89_v9  ;;  %v2471_v14 = vpack.c.bf16 %v108_v12, %v107_v11  ;;  %v92_v16 = vld [vmem:[#allocation4 + $0x28] sm:$0xff]  ;;  %v109_v17 = vld [vmem:[#allocation4 + $0xb0] sm:$0xff]  ;;  %v110_v18 = vld [vmem:[#allocation4 + $0xb8] sm:$0xff] }
  0x3b   :  { %2468 = vmatprep.subr.bf16.mxu0 %v2467_v8  ;;  %v2473_v19 = vpack.c.bf16 %v92_v16, %v91_v15  ;;  %v2475_v20 = vpack.c.bf16 %v110_v18, %v109_v17  ;;  %v93_v21 = vld [vmem:[#allocation4 + $0x30] sm:$0xff]  ;;  %v94_v22 = vld [vmem:[#allocation4 + $0x38] sm:$0xff]  ;;  %v111_v23 = vld [vmem:[#allocation4 + $0xc0] sm:$0xff] }
  0x3c   :  { %v112_v24 = vld [vmem:[#allocation4 + $0xc8] sm:$0xff]  ;;  %v2477_v26 = vpack.c.bf16 %v94_v22, %v93_v21  ;;  %v95_v28 = vld [vmem:[#allocation4 + $0x40] sm:$0xff]  ;;  %v113_v30 = vld [vmem:[#allocation4 + $0xd0] sm:$0xff] }
  0x3d   :  { %v56_v25 = vld [vmem:[#allocation2 + $0x8] sm:$0xff]  ;;  %v2479_v27 = vpack.c.bf16 %v112_v24, %v111_v23  ;;  %v114_v31 = vld [vmem:[#allocation4 + $0xd8] sm:$0xff]  ;;  %v97_v34 = vld [vmem:[#allocation4 + $0x50] sm:$0xff] }
  0x3e   :  { %2470 = vmatpush3.bf16.msra.mxu0 %v2469_v13  ;;  %183 = vmatprep.mubr.f32.mxu0 %v56_v25  ;;  %v96_v29 = vld [vmem:[#allocation4 + $0x48] sm:$0xff]  ;;  %v2483_v33 = vpack.c.bf16 %v114_v31, %v113_v30  ;;  %v98_v35 = vld [vmem:[#allocation4 + $0x58] sm:$0xff]  ;;  %v115_v36 = vld [vmem:[#allocation4 + $0xe0] sm:$0xff] }
  0x3f   :  { %2472 = vmatprep.subr.bf16.mxu0 %v2471_v14  ;;  %v2481_v32 = vpack.c.bf16 %v96_v29, %v95_v28  ;;  %v116_v37 = vld [vmem:[#allocation4 + $0xe8] sm:$0xff]  ;;  %v2485_v38 = vpack.c.bf16 %v98_v35, %v97_v34  ;;  %v99_v40 = vld [vmem:[#allocation4 + $0x60] sm:$0xff]  ;;  %v117_v42 = vld [vmem:[#allocation4 + $0xf0] sm:$0xff] }
  0x40   :  { %v2487_v39 = vpack.c.bf16 %v116_v37, %v115_v36  ;;  %v100_v41 = vld [vmem:[#allocation4 + $0x68] sm:$0xff]  ;;  %v118_v43 = vld [vmem:[#allocation4 + $0xf8] sm:$0xff]  ;;  %v101_v46 = vld [vmem:[#allocation4 + $0x70] sm:$0xff] }
  0x41   :  { %v2489_v44 = vpack.c.bf16 %v100_v41, %v99_v40  ;;  %v2491_v45 = vpack.c.bf16 %v118_v43, %v117_v42  ;;  %v102_v47 = vld [vmem:[#allocation4 + $0x78] sm:$0xff]  ;;  %v55_v49 = vld [vmem:[#allocation2] sm:$0xff]  ;;  %v57_v51 = vld [vmem:[#allocation2 + $0x10] sm:$0xff] }
  0x42   :  { %2474 = vmatpush3.bf16.msra.mxu0 %v2473_v19  ;;  %v2493_v48 = vpack.c.bf16 %v102_v47, %v101_v46  ;;  %v58_v50 = vld [vmem:[#allocation2 + $0x18] sm:$0xff]  ;;  %v60_v52 = vld [vmem:[#allocation2 + $0x28] sm:$0xff]  ;;  %v59_v53 = vld [vmem:[#allocation2 + $0x20] sm:$0xff] }
  0x43   :  { %2476 = vmatprep.subr.bf16.mxu0 %v2475_v20  ;;  %v62_v54 = vld [vmem:[#allocation2 + $0x38] sm:$0xff]  ;;  %v61_v55 = vld [vmem:[#allocation2 + $0x30] sm:$0xff]  ;;  %v64_v56 = vld [vmem:[#allocation2 + $0x48] sm:$0xff] }
  0x44   :  { %v63_v57 = vld [vmem:[#allocation2 + $0x40] sm:$0xff]  ;;  %v66_v58 = vld [vmem:[#allocation2 + $0x58] sm:$0xff]  ;;  %v65_v59 = vld [vmem:[#allocation2 + $0x50] sm:$0xff] }
  0x45   :  { %v68_v60 = vld [vmem:[#allocation2 + $0x68] sm:$0xff]  ;;  %v67_v61 = vld [vmem:[#allocation2 + $0x60] sm:$0xff]  ;;  %v70_v62 = vld [vmem:[#allocation2 + $0x78] sm:$0xff] }
  0x46   :  { %2478 = vmatpush3.bf16.msra.mxu0 %v2477_v26  ;;  %v69_v63 = vld [vmem:[#allocation2 + $0x70] sm:$0xff]  ;;  %v72_v0 = vld [vmem:[#allocation2 + $0x88] sm:$0xff]  ;;  %v71_v1 = vld [vmem:[#allocation2 + $0x80] sm:$0xff] }
  0x47   :  { %2480 = vmatprep.subr.bf16.mxu0 %v2479_v27  ;;  %v74_v2 = vld [vmem:[#allocation2 + $0x98] sm:$0xff]  ;;  %v73_v3 = vld [vmem:[#allocation2 + $0x90] sm:$0xff]  ;;  %v76_v4 = vld [vmem:[#allocation2 + $0xa8] sm:$0xff] }
  0x48   :  { %v75_v5 = vld [vmem:[#allocation2 + $0xa0] sm:$0xff]  ;;  %v78_v6 = vld [vmem:[#allocation2 + $0xb8] sm:$0xff]  ;;  %v77_v7 = vld [vmem:[#allocation2 + $0xb0] sm:$0xff] }
  0x49   :  { %v80_v8 = vld [vmem:[#allocation2 + $0xc8] sm:$0xff]  ;;  %v79_v9 = vld [vmem:[#allocation2 + $0xc0] sm:$0xff]  ;;  %v82_v10 = vld [vmem:[#allocation2 + $0xd8] sm:$0xff] }
  0x4a   :  { %2482 = vmatpush3.bf16.msra.mxu0 %v2481_v32  ;;  %v81_v11 = vld [vmem:[#allocation2 + $0xd0] sm:$0xff]  ;;  %v84_v12 = vld [vmem:[#allocation2 + $0xe8] sm:$0xff]  ;;  %v83_v13 = vld [vmem:[#allocation2 + $0xe0] sm:$0xff] }
  0x4b   :  { %2484 = vmatprep.subr.bf16.mxu0 %v2483_v33  ;;  %v86_v14 = vld [vmem:[#allocation2 + $0xf8] sm:$0xff]  ;;  %v85_v15 = vld [vmem:[#allocation2 + $0xf0] sm:$0xff]  ;;  %v390_v16 = vld [vmem:[#allocation4 + $0x100] sm:$0xff] }
  0x4c   :  { %v391_v17 = vld [vmem:[#allocation4 + $0x108] sm:$0xff]  ;;  %v392_v19 = vld [vmem:[#allocation4 + $0x110] sm:$0xff]  ;;  %v393_v20 = vld [vmem:[#allocation4 + $0x118] sm:$0xff] }
  0x4d   :  { %v2495_v18 = vpack.c.bf16 %v391_v17, %v390_v16  ;;  %v2499_v21 = vpack.c.bf16 %v393_v20, %v392_v19  ;;  %v394_v22 = vld [vmem:[#allocation4 + $0x120] sm:$0xff]  ;;  %v395_v23 = vld [vmem:[#allocation4 + $0x128] sm:$0xff]  ;;  %v396_v25 = vld [vmem:[#allocation4 + $0x130] sm:$0xff] }
  0x4e   :  { %2486 = vmatpush3.bf16.msra.mxu0 %v2485_v38  ;;  %v2503_v24 = vpack.c.bf16 %v395_v23, %v394_v22  ;;  %v397_v26 = vld [vmem:[#allocation4 + $0x138] sm:$0xff]  ;;  %v398_v28 = vld [vmem:[#allocation4 + $0x140] sm:$0xff]  ;;  %v399_v29 = vld [vmem:[#allocation4 + $0x148] sm:$0xff] }
  0x4f   :  { %2488 = vmatprep.subr.bf16.mxu0 %v2487_v39  ;;  %2496 = vmatprep.subr.bf16.mxu1 %v2495_v18  ;;  %v2507_v27 = vpack.c.bf16 %v397_v26, %v396_v25  ;;  %v2511_v30 = vpack.c.bf16 %v399_v29, %v398_v28  ;;  %v400_v31 = vld [vmem:[#allocation4 + $0x150] sm:$0xff]  ;;  %v401_v32 = vld [vmem:[#allocation4 + $0x158] sm:$0xff]  ;;  %v402_v34 = vld [vmem:[#allocation4 + $0x160] sm:$0xff] }
  0x50   :  { %2498 = vmatpush3.bf16.msra.mxu1 %v2495_v18  ;;  %v2515_v33 = vpack.c.bf16 %v401_v32, %v400_v31  ;;  %v403_v35 = vld [vmem:[#allocation4 + $0x168] sm:$0xff]  ;;  %v404_v37 = vld [vmem:[#allocation4 + $0x170] sm:$0xff]  ;;  %v405_v38 = vld [vmem:[#allocation4 + $0x178] sm:$0xff] }
  0x51   :  { %2500 = vmatprep.subr.bf16.mxu1 %v2499_v21  ;;  %v2519_v36 = vpack.c.bf16 %v403_v35, %v402_v34  ;;  %v2523_v39 = vpack.c.bf16 %v405_v38, %v404_v37 }
  0x52   :  { %2490 = vmatpush3.bf16.msra.mxu0 %v2489_v44 }
  0x53   :  { %2492 = vmatprep.subr.bf16.mxu0 %v2491_v45 }
  0x54   :  { %2502 = vmatpush3.bf16.msra.mxu1 %v2499_v21 }
  0x55   :  { %2504 = vmatprep.subr.bf16.mxu1 %v2503_v24 }
  0x56   :  { %2494 = vmatpush3.bf16.msra.mxu0 %v2493_v48 }
  0x58   :  { %2506 = vmatpush3.bf16.msra.mxu1 %v2503_v24 }
  0x59   :  { %184 = vmatmul.mubr.f32.vlgmr.msra.gmra.mrb[0].mxu0 %v55_v49  ;;  %2508 = vmatprep.subr.bf16.mxu1 %v2507_v27 }
  0x5a   :  { %188 = vmatprep.mubr.f32.mxu0 %v58_v50 }
  0x5c   :  { %2510 = vmatpush3.bf16.msra.mxu1 %v2507_v27 }
  0x5d   :  { %189 = vmatmul.mubr.f32.gmra.mrb[2].mxu0 %v57_v51  ;;  %2512 = vmatprep.subr.bf16.mxu1 %v2511_v30 }
  0x5e   :  { %193 = vmatprep.mubr.f32.mxu0 %v60_v52 }
  0x60   :  { %2514 = vmatpush3.bf16.msra.mxu1 %v2511_v30 }
  0x61   :  { %194 = vmatmul.mubr.f32.gmra.mrb[4].mxu0 %v59_v53  ;;  %2516 = vmatprep.subr.bf16.mxu1 %v2515_v33 }
  0x62   :  { %198 = vmatprep.mubr.f32.mxu0 %v62_v54 }
  0x64   :  { %2518 = vmatpush3.bf16.msra.mxu1 %v2515_v33 }
  0x65   :  { %199 = vmatmul.mubr.f32.gmra.mrb[6].mxu0 %v61_v55  ;;  %2520 = vmatprep.subr.bf16.mxu1 %v2519_v36 }
  0x66   :  { %203 = vmatprep.mubr.f32.mxu0 %v64_v56 }
  0x68   :  { %2522 = vmatpush3.bf16.msra.mxu1 %v2519_v36 }
  0x69   :  { %204 = vmatmul.mubr.f32.gmra.mrb[8].mxu0 %v63_v57  ;;  %2524 = vmatprep.subr.bf16.mxu1 %v2523_v39 }
  0x6a   :  { %208 = vmatprep.mubr.f32.mxu0 %v66_v58 }
  0x6c   :  { %2526 = vmatpush3.bf16.msra.mxu1 %v2523_v39 }
  0x6d   :  { %209 = vmatmul.mubr.f32.gmra.mrb[10].mxu0 %v65_v59 }
  0x6e   :  { %213 = vmatprep.mubr.f32.mxu0 %v68_v60 }
  0x71   :  { %214 = vmatmul.mubr.f32.gmra.mrb[12].mxu0 %v67_v61 }
  0x72   :  { %218 = vmatprep.mubr.f32.mxu0 %v70_v62 }
  0x75   :  { %219 = vmatmul.mubr.f32.gmra.mrb[14].mxu0 %v69_v63 }
  0x76   :  { %223 = vmatprep.mubr.f32.mxu0 %v72_v0 }
  0x79   :  { %224 = vmatmul.mubr.f32.gmra.mrb[16].mxu0 %v71_v1 }
  0x7a   :  { %228 = vmatprep.mubr.f32.mxu0 %v74_v2 }
  0x7d   :  { %229 = vmatmul.mubr.f32.gmra.mrb[18].mxu0 %v73_v3 }
  0x7e   :  { %233 = vmatprep.mubr.f32.mxu0 %v76_v4 }
  0x81   :  { %234 = vmatmul.mubr.f32.gmra.mrb[20].mxu0 %v75_v5 }
  0x82   :  { %238 = vmatprep.mubr.f32.mxu0 %v78_v6 }
  0x85   :  { %239 = vmatmul.mubr.f32.gmra.mrb[22].mxu0 %v77_v7 }
  0x86   :  { %243 = vmatprep.mubr.f32.mxu0 %v80_v8 }
  0x89   :  { %244 = vmatmul.mubr.f32.gmra.mrb[24].mxu0 %v79_v9 }
  0x8a   :  { %248 = vmatprep.mubr.f32.mxu0 %v82_v10 }
  0x8d   :  { %249 = vmatmul.mubr.f32.gmra.mrb[26].mxu0 %v81_v11 }
  0x8e   :  { %253 = vmatprep.mubr.f32.mxu0 %v84_v12 }
  0x91   :  { %254 = vmatmul.mubr.f32.gmra.mrb[28].mxu0 %v83_v13 }
  0x92   :  { %258 = vmatprep.mubr.f32.mxu0 %v86_v14 }
  0x95   :  { %259 = vmatmul.mubr.f32.gmra.mrb[30].mxu0 %v85_v15 }
 0x12c   :  { %v1975_v40 = vpop.f32.mrb[0].mxu0 }
 0x12d   :  { %v1976_v41 = vpop.f32.mrb[1].mxu0 }
 0x12e   :  { %v2893_v42 = vadd.f32 %v1976_v41, %v1975_v40 }
 0x130   :  { %v1978_v43 = vpop.f32.mrb[2].mxu0  ;;  %v285_v62 = vmul.f32 %v2893_v42, %v2893_v42 }
 0x131   :  { %v1979_v44 = vpop.f32.mrb[3].mxu0 }
 0x132   :  { %v2895_v45 = vadd.f32 %v1979_v44, %v1978_v43 }
 0x134   :  { %v1981_v46 = vpop.f32.mrb[4].mxu0  ;;  %v286_v60 = vmul.f32 %v2895_v45, %v2895_v45  ;;  %v264_v63 = vadd.f32 %v2895_v45, %v2893_v42 }
 0x135   :  { %v1982_v47 = vpop.f32.mrb[5].mxu0 }
 0x136   :  { %v2897_v48 = vadd.f32 %v1982_v47, %v1981_v46  ;;  %v301_v3 = vadd.f32 %v286_v60, %v285_v62 }
 0x138   :  { %v1984_v49 = vpop.f32.mrb[6].mxu0  ;;  %v287_v0 = vmul.f32 %v2897_v48, %v2897_v48  ;;  %v265_v4 = vadd.f32 %v2897_v48, %v264_v63 }
 0x139   :  { %v1985_v50 = vpop.f32.mrb[7].mxu0 }
 0x13a   :  { %v2899_v51 = vadd.f32 %v1985_v50, %v1984_v49  ;;  %v302_v7 = vadd.f32 %v301_v3, %v287_v0 }
 0x13c   :  { %v1987_v52 = vpop.f32.mrb[8].mxu0  ;;  %v288_v5 = vmul.f32 %v2899_v51, %v2899_v51  ;;  %v266_v8 = vadd.f32 %v2899_v51, %v265_v4 }
 0x13d   :  { %v1988_v53 = vpop.f32.mrb[9].mxu0 }
 0x13e   :  { %v2901_v54 = vadd.f32 %v1988_v53, %v1987_v52  ;;  %v303_v12 = vadd.f32 %v302_v7, %v288_v5 }
 0x140   :  { %v1990_v55 = vpop.f32.mrb[10].mxu0  ;;  %v289_v9 = vmul.f32 %v2901_v54, %v2901_v54  ;;  %v267_v13 = vadd.f32 %v2901_v54, %v266_v8 }
 0x141   :  { %v1991_v56 = vpop.f32.mrb[11].mxu0 }
 0x142   :  { %v2903_v57 = vadd.f32 %v1991_v56, %v1990_v55  ;;  %v304_v16 = vadd.f32 %v303_v12, %v289_v9 }
 0x144   :  { %v1993_v58 = vpop.f32.mrb[12].mxu0  ;;  %v290_v14 = vmul.f32 %v2903_v57, %v2903_v57  ;;  %v268_v17 = vadd.f32 %v2903_v57, %v267_v13 }
 0x145   :  { %v1994_v59 = vpop.f32.mrb[13].mxu0 }
 0x146   :  { %v2907_v61 = vadd.f32 %v1994_v59, %v1993_v58  ;;  %v305_v21 = vadd.f32 %v304_v16, %v290_v14 }
 0x148   :  { %v1996_v1 = vpop.f32.mrb[14].mxu0  ;;  %v291_v18 = vmul.f32 %v2907_v61, %v2907_v61  ;;  %v269_v22 = vadd.f32 %v2907_v61, %v268_v17 }
 0x149   :  { %v1997_v2 = vpop.f32.mrb[15].mxu0 }
 0x14a   :  { %v2918_v6 = vadd.f32 %v1997_v2, %v1996_v1  ;;  %v306_v25 = vadd.f32 %v305_v21, %v291_v18 }
 0x14c   :  { %v1999_v10 = vpop.f32.mrb[16].mxu0  ;;  %v292_v23 = vmul.f32 %v2918_v6, %v2918_v6  ;;  %v270_v26 = vadd.f32 %v2918_v6, %v269_v22 }
 0x14d   :  { %v2000_v11 = vpop.f32.mrb[17].mxu0 }
 0x14e   :  { %v2926_v15 = vadd.f32 %v2000_v11, %v1999_v10  ;;  %v307_v30 = vadd.f32 %v306_v25, %v292_v23 }
 0x150   :  { %v2002_v19 = vpop.f32.mrb[18].mxu0  ;;  %v293_v27 = vmul.f32 %v2926_v15, %v2926_v15  ;;  %v271_v31 = vadd.f32 %v2926_v15, %v270_v26 }
 0x151   :  { %v2003_v20 = vpop.f32.mrb[19].mxu0 }
 0x152   :  { %v2934_v24 = vadd.f32 %v2003_v20, %v2002_v19  ;;  %v308_v34 = vadd.f32 %v307_v30, %v293_v27 }
 0x154   :  { %v2005_v28 = vpop.f32.mrb[20].mxu0  ;;  %v294_v32 = vmul.f32 %v2934_v24, %v2934_v24  ;;  %v272_v35 = vadd.f32 %v2934_v24, %v271_v31 }
 0x155   :  { %v2006_v29 = vpop.f32.mrb[21].mxu0 }
 0x156   :  { %v2942_v33 = vadd.f32 %v2006_v29, %v2005_v28  ;;  %v309_v39 = vadd.f32 %v308_v34, %v294_v32 }
 0x158   :  { %v295_v36 = vmul.f32 %v2942_v33, %v2942_v33  ;;  %v2008_v37 = vpop.f32.mrb[22].mxu0  ;;  %v273_v40 = vadd.f32 %v2942_v33, %v272_v35  ;;  %v334_v35 = vlaneseq }
 0x159   :  { %v2009_v38 = vpop.f32.mrb[23].mxu0 }
 0x15a   :  { %v2948_v41 = vadd.f32 %v2009_v38, %v2008_v37  ;;  %v310_v43 = vadd.f32 %v309_v39, %v295_v36  ;;  %v335_v36 = vshrl.u32 %v334_v35, 7  ;;  %v327_v37 = vld [vmem:[#allocation6] sm:$0x1] }
 0x15c   :  { %v274_v44 = vadd.f32 %v2948_v41, %v273_v40  ;;  %v296_v46 = vmul.f32 %v2948_v41, %v2948_v41  ;;  %v2011_v47 = vpop.f32.mrb[24].mxu0  ;;  %v2968_v38 = vsub.s32 0, %v335_v36  ;;  %v681_v36 = vld [vmem:[#allocation4 + $0x1a0] sm:$0xff] }
 0x15d   :  { %v2012_v49 = vpop.f32.mrb[25].mxu0 }
 0x15e   :  { %v311_v50 = vadd.f32 %v310_v43, %v296_v46  ;;  %v2953_v52 = vadd.f32 %v2012_v49, %v2011_v47  ;;  %v328_v43 = vld [vmem:[#allocation6 + $0x1] sm:$0x1] }
 0x160   :  { %v275_v53 = vadd.f32 %v2953_v52, %v274_v44  ;;  %v297_v55 = vmul.f32 %v2953_v52, %v2953_v52  ;;  %v2014_v56 = vpop.f32.mrb[26].mxu0 }
 0x161   :  { %v2015_v58 = vpop.f32.mrb[27].mxu0 }
 0x162   :  { %v312_v59 = vadd.f32 %v311_v50, %v297_v55  ;;  %v2958_v60 = vadd.f32 %v2015_v58, %v2014_v56 }
 0x164   :  { %v276_v62 = vadd.f32 %v2958_v60, %v275_v53  ;;  %v298_v63 = vmul.f32 %v2958_v60, %v2958_v60  ;;  %v2017_v0 = vpop.f32.mrb[28].mxu0 }
 0x165   :  { %v2018_v1 = vpop.f32.mrb[29].mxu0 }
 0x166   :  { %v313_v2 = vadd.f32 %v312_v59, %v298_v63  ;;  %v2963_v3 = vadd.f32 %v2018_v1, %v2017_v0 }
 0x168   :  { %v277_v4 = vadd.f32 %v2963_v3, %v276_v62  ;;  %v299_v5 = vmul.f32 %v2963_v3, %v2963_v3  ;;  %v2020_v7 = vpop.f32.mrb[30].mxu0 }
 0x169   :  { %v2021_v8 = vpop.f32.mrb[31].mxu0 }
 0x16a   :  { %v314_v9 = vadd.f32 %v313_v2, %v299_v5  ;;  %v2022_v10 = vadd.f32 %v2021_v8, %v2020_v7 }
 0x16c   :  { %v278_v11 = vadd.f32 %v2022_v10, %v277_v4  ;;  %v300_v12 = vmul.f32 %v2022_v10, %v2022_v10 }
 0x16e   :  { %v279_v13 = vrot.slane %v278_v11, 4  ;;  %v315_v14 = vadd.f32 %v314_v9, %v300_v12 }
 0x170   :  { %v280_v16 = vadd.f32 %v279_v13, %v278_v11  ;;  %v316_v17 = vrot.slane %v315_v14, 4 }
 0x172   :  { %v281_v18 = vrot.slane %v280_v16, 2  ;;  %v317_v19 = vadd.f32 %v316_v17, %v315_v14 }
 0x174   :  { %v282_v20 = vadd.f32 %v281_v18, %v280_v16  ;;  %v318_v21 = vrot.slane %v317_v19, 2 }
 0x176   :  { %v283_v22 = vrot.slane %v282_v20, 1  ;;  %v319_v23 = vadd.f32 %v318_v21, %v317_v19 }
 0x178   :  { %v284_v25 = vadd.f32 %v283_v22, %v282_v20  ;;  %v320_v26 = vrot.slane %v319_v23, 1 }
 0x17a   :  { %v321_v27 = vadd.f32 %v320_v26, %v319_v23  ;;  %v322_v28 = vmul.f32 0.0078125, %v284_v25 }
 0x17c   :  { %v323_v29 = vmul.f32 0.0078125, %v321_v27  ;;  %v324_v30 = vmul.f32 %v322_v28, %v322_v28 }
 0x17e   :  { %v325_v31 = vsub.f32 %v323_v29, %v324_v30  ;;  %v677_v29 = vld [vmem:[#allocation4 + $0x180] sm:$0xff]  ;;  %v678_v30 = vld [vmem:[#allocation4 + $0x188] sm:$0xff] }
 0x180   :  { %v326_v32 = vmax.f32 %v325_v31, 0.0  ;;  %v2527_v31 = vpack.c.bf16 %v678_v30, %v677_v29 }
 0x182   :  { %v329_v34 = vadd.f32 1e-05, %v326_v32  ;;  %2528 = vmatprep.subr.bf16.mxu1 %v2527_v31  ;;  %v679_v32 = vld [vmem:[#allocation4 + $0x190] sm:$0xff] }
 0x184   :  { %2678 = vrsqrt.f32 %v329_v34  ;;  %v680_v34 = vld [vmem:[#allocation4 + $0x198] sm:$0xff] }
 0x185   :  { %v2531_v35 = vpack.c.bf16 %v680_v34, %v679_v32 }
 0x18e   :  { %v2679_v39 = vpop.eup %2678 }
 0x18f   :  { %v331_v40 = vmul.f32 %v2679_v39, %v327_v37  ;;  %v682_v37 = vld [vmem:[#allocation4 + $0x1a8] sm:$0xff] }
 0x190   :  { %v2535_v39 = vpack.c.bf16 %v682_v37, %v681_v36 }
 0x191   :  { %v332_v44 = vmul.f32 %v331_v40, %v322_v28  ;;  %v337_v46 = vrot.slane %v331_v40, %v2968_v38  ;;  %v683_v40 = vld [vmem:[#allocation4 + $0x1b0] sm:$0xff] }
 0x193   :  { %v333_v47 = vsub.f32 %v328_v43, %v332_v44  ;;  %v353_v49 = vmul.f32 %v2022_v10, %v337_v46  ;;  %v338_v50 = vmul.f32 %v2893_v42, %v337_v46  ;;  %v339_v53 = vmul.f32 %v2895_v45, %v337_v46  ;;  %v684_v43 = vld [vmem:[#allocation4 + $0x1b8] sm:$0xff] }
 0x194   :  { %v340_v55 = vmul.f32 %v2897_v48, %v337_v46  ;;  %v341_v56 = vmul.f32 %v2899_v51, %v337_v46  ;;  %v342_v59 = vmul.f32 %v2901_v54, %v337_v46  ;;  %v343_v62 = vmul.f32 %v2903_v57, %v337_v46 }
 0x195   :  { %v357_v58 = vrot.slane %v333_v47, %v2968_v38  ;;  %v344_v63 = vmul.f32 %v2907_v61, %v337_v46  ;;  %v345_v0 = vmul.f32 %v2918_v6, %v337_v46  ;;  %v348_v1 = vmul.f32 %v2942_v33, %v337_v46  ;;  %v686_v47 = vld [vmem:[#allocation4 + $0x1c8] sm:$0xff] }
 0x196   :  { %v349_v42 = vmul.f32 %v2948_v41, %v337_v46  ;;  %v350_v45 = vmul.f32 %v2953_v52, %v337_v46  ;;  %v346_v61 = vmul.f32 %v2926_v15, %v337_v46  ;;  %v347_v6 = vmul.f32 %v2934_v24, %v337_v46 }
 0x197   :  { %v358_v2 = vadd.f32 %v357_v58, %v338_v50  ;;  %v359_v48 = vadd.f32 %v357_v58, %v339_v53  ;;  %v360_v4 = vadd.f32 %v357_v58, %v340_v55  ;;  %v361_v51 = vadd.f32 %v357_v58, %v341_v56  ;;  %v687_v50 = vld [vmem:[#allocation4 + $0x1d0] sm:$0xff]  ;;  %v688_v53 = vld [vmem:[#allocation4 + $0x1d8] sm:$0xff]  ;;  %v689_v55 = vld [vmem:[#allocation4 + $0x1e0] sm:$0xff] }
 0x198   :  { %v362_v5 = vadd.f32 %v357_v58, %v342_v59  ;;  %v363_v7 = vadd.f32 %v357_v58, %v343_v62  ;;  %v364_v8 = vadd.f32 %v357_v58, %v344_v63  ;;  %v365_v54 = vadd.f32 %v357_v58, %v345_v0  ;;  %v691_v62 = vld [vmem:[#allocation4 + $0x1f0] sm:$0xff]  ;;  %v692_v63 = vld [vmem:[#allocation4 + $0x1f8] sm:$0xff] }
 0x199   :  { %v374_v9 = vmax.f32 %v358_v2, 0.0  ;;  %v375_v57 = vmax.f32 %v359_v48, 0.0  ;;  %v376_v10 = vmax.f32 %v360_v4, 0.0  ;;  %v366_v33 = vadd.f32 %v357_v58, %v346_v61 }
 0x19a   :  { %v367_v41 = vadd.f32 %v357_v58, %v347_v6  ;;  %v368_v11 = vadd.f32 %v357_v58, %v348_v1  ;;  %v369_v52 = vadd.f32 %v357_v58, %v349_v42  ;;  %v370_v12 = vadd.f32 %v357_v58, %v350_v45 }
 0x19b   :  { %2215 = vmatprep.mubr.f32.mxu1 %v374_v9  ;;  %v351_v13 = vmul.f32 %v2958_v60, %v337_v46  ;;  %v352_v14 = vmul.f32 %v2963_v3, %v337_v46  ;;  %v373_v16 = vadd.f32 %v357_v58, %v353_v49  ;;  %v377_v17 = vmax.f32 %v361_v51, 0.0  ;;  %v685_v46 = vld [vmem:[#allocation4 + $0x1c0] sm:$0xff] }
 0x19c   :  { %2216 = vmatmul.mubr.f32.vlgmr.msra.gmra.mrb[0].mxu1 %v375_v57  ;;  %v378_v15 = vmax.f32 %v362_v5, 0.0  ;;  %v379_v24 = vmax.f32 %v363_v7, 0.0  ;;  %v380_v20 = vmax.f32 %v364_v8, 0.0  ;;  %v381_v21 = vmax.f32 %v365_v54, 0.0 }
 0x19d   :  { %2218 = vmatprep.mubr.f32.mxu1 %v376_v10  ;;  %v371_v18 = vadd.f32 %v357_v58, %v351_v13  ;;  %v372_v19 = vadd.f32 %v357_v58, %v352_v14  ;;  %v382_v22 = vmax.f32 %v366_v33, 0.0  ;;  %v383_v23 = vmax.f32 %v367_v41, 0.0  ;;  %2530 = vmatpush3.bf16.msra.mxu1 %v2527_v31  ;;  %v690_v58 = vld [vmem:[#allocation4 + $0x1e8] sm:$0xff] }
 0x19e   :  { %v384_v60 = vmax.f32 %v368_v11, 0.0  ;;  %v385_v3 = vmax.f32 %v369_v52, 0.0  ;;  %v386_v25 = vmax.f32 %v370_v12, 0.0  ;;  %v389_v28 = vmax.f32 %v373_v16, 0.0  ;;  %2532 = vmatprep.subr.bf16.mxu1 %v2531_v35 }
 0x19f   :  { %v387_v26 = vmax.f32 %v371_v18, 0.0  ;;  %v388_v27 = vmax.f32 %v372_v19, 0.0  ;;  %v2539_v44 = vpack.c.bf16 %v684_v43, %v683_v40  ;;  %v2543_v49 = vpack.c.bf16 %v686_v47, %v685_v46 }
 0x1a0   :  { %2219 = vmatmul.mubr.f32.gmra.mrb[2].mxu1 %v377_v17  ;;  %v2547_v56 = vpack.c.bf16 %v688_v53, %v687_v50  ;;  %v2551_v59 = vpack.c.bf16 %v690_v58, %v689_v55  ;;  %v2555_v0 = vpack.c.bf16 %v692_v63, %v691_v62 }
 0x1a1   :  { %2221 = vmatprep.mubr.f32.mxu1 %v378_v15  ;;  %2534 = vmatpush3.bf16.msra.mxu1 %v2531_v35 }
 0x1a2   :  { %2536 = vmatprep.subr.bf16.mxu1 %v2535_v39 }
 0x1a4   :  { %2222 = vmatmul.mubr.f32.gmra.mrb[4].mxu1 %v379_v24 }
 0x1a5   :  { %2224 = vmatprep.mubr.f32.mxu1 %v380_v20  ;;  %2538 = vmatpush3.bf16.msra.mxu1 %v2535_v39 }
 0x1a6   :  { %2540 = vmatprep.subr.bf16.mxu1 %v2539_v44 }
 0x1a8   :  { %2225 = vmatmul.mubr.f32.gmra.mrb[6].mxu1 %v381_v21 }
 0x1a9   :  { %2227 = vmatprep.mubr.f32.mxu1 %v382_v22  ;;  %2542 = vmatpush3.bf16.msra.mxu1 %v2539_v44 }
 0x1aa   :  { %2544 = vmatprep.subr.bf16.mxu1 %v2543_v49 }
 0x1ac   :  { %2228 = vmatmul.mubr.f32.gmra.mrb[8].mxu1 %v383_v23 }
 0x1ad   :  { %2230 = vmatprep.mubr.f32.mxu1 %v384_v60  ;;  %2546 = vmatpush3.bf16.msra.mxu1 %v2543_v49 }
 0x1ae   :  { %2548 = vmatprep.subr.bf16.mxu1 %v2547_v56 }
 0x1b0   :  { %2231 = vmatmul.mubr.f32.gmra.mrb[10].mxu1 %v385_v3 }
 0x1b1   :  { %2233 = vmatprep.mubr.f32.mxu1 %v386_v25  ;;  %2550 = vmatpush3.bf16.msra.mxu1 %v2547_v56 }
 0x1b2   :  { %2552 = vmatprep.subr.bf16.mxu1 %v2551_v59 }
 0x1b4   :  { %2234 = vmatmul.mubr.f32.gmra.mrb[12].mxu1 %v387_v26 }
 0x1b5   :  { %2236 = vmatprep.mubr.f32.mxu1 %v388_v27  ;;  %2554 = vmatpush3.bf16.msra.mxu1 %v2551_v59 }
 0x1b6   :  { %2556 = vmatprep.subr.bf16.mxu1 %v2555_v0 }
 0x1b8   :  { %2237 = vmatmul.mubr.f32.gmra.mrb[14].mxu1 %v389_v28 }
 0x1b9   :  { %2558 = vmatpush3.bf16.msra.mxu1 %v2555_v0 }
 0x26f   :  { %v2987_v1 = vpop.f32.mrb[0].mxu1 }
 0x270   :  { %v573_v42 = vmul.f32 %v2987_v1, %v2987_v1  ;;  %v2991_v45 = vpop.f32.mrb[1].mxu1 }
 0x271   :  { %v551_v2 = vadd.f32 %v2987_v1, %v2991_v45  ;;  %v572_v48 = vmul.f32 %v2991_v45, %v2991_v45 }
 0x273   :  { %v588_v4 = vadd.f32 %v573_v42, %v572_v48  ;;  %v2997_v51 = vpop.f32.mrb[2].mxu1 }
 0x274   :  { %v2999_v5 = vpop.f32.mrb[3].mxu1  ;;  %v575_v54 = vmul.f32 %v2997_v51, %v2997_v51 }
 0x275   :  { %v552_v7 = vadd.f32 %v551_v2, %v2999_v5  ;;  %v574_v8 = vmul.f32 %v2999_v5, %v2999_v5 }
 0x277   :  { %v589_v9 = vadd.f32 %v588_v4, %v574_v8  ;;  %v3006_v57 = vpop.f32.mrb[4].mxu1  ;;  %v553_v61 = vadd.f32 %v2997_v51, %v552_v7 }
 0x278   :  { %v3009_v6 = vpop.f32.mrb[5].mxu1  ;;  %v577_v11 = vmul.f32 %v3006_v57, %v3006_v57 }
 0x279   :  { %v554_v10 = vadd.f32 %v553_v61, %v3009_v6  ;;  %v576_v33 = vmul.f32 %v3009_v6, %v3009_v6  ;;  %v590_v41 = vadd.f32 %v589_v9, %v575_v54 }
 0x27b   :  { %v591_v52 = vadd.f32 %v590_v41, %v576_v33  ;;  %v3016_v12 = vpop.f32.mrb[6].mxu1  ;;  %v555_v13 = vadd.f32 %v3006_v57, %v554_v10 }
 0x27c   :  { %v3019_v14 = vpop.f32.mrb[7].mxu1  ;;  %v579_v19 = vmul.f32 %v3016_v12, %v3016_v12 }
 0x27d   :  { %v556_v16 = vadd.f32 %v555_v13, %v3019_v14  ;;  %v578_v17 = vmul.f32 %v3019_v14, %v3019_v14  ;;  %v592_v18 = vadd.f32 %v591_v52, %v577_v11 }
 0x27f   :  { %v593_v15 = vadd.f32 %v592_v18, %v578_v17  ;;  %v3026_v24 = vpop.f32.mrb[8].mxu1  ;;  %v557_v20 = vadd.f32 %v3016_v12, %v556_v16  ;;  %v614_v18 = vld [vmem:[#allocation6 + $0x2] sm:$0x1] }
 0x280   :  { %v3029_v21 = vpop.f32.mrb[9].mxu1  ;;  %v581_v3 = vmul.f32 %v3026_v24, %v3026_v24 }
 0x281   :  { %v558_v22 = vadd.f32 %v557_v20, %v3029_v21  ;;  %v580_v23 = vmul.f32 %v3029_v21, %v3029_v21  ;;  %v594_v60 = vadd.f32 %v593_v15, %v579_v19  ;;  %v615_v20 = vld [vmem:[#allocation6 + $0x3] sm:$0x1] }
 0x283   :  { %v595_v25 = vadd.f32 %v594_v60, %v580_v23  ;;  %v3036_v26 = vpop.f32.mrb[10].mxu1  ;;  %v559_v27 = vadd.f32 %v3026_v24, %v558_v22 }
 0x284   :  { %v522_v28 = vpop.f32.mrb[11].mxu1  ;;  %v583_v32 = vmul.f32 %v3036_v26, %v3036_v26 }
 0x285   :  { %v560_v29 = vadd.f32 %v559_v27, %v522_v28  ;;  %v582_v30 = vmul.f32 %v522_v28, %v522_v28  ;;  %v596_v31 = vadd.f32 %v595_v25, %v581_v3 }
 0x287   :  { %v597_v34 = vadd.f32 %v596_v31, %v582_v30  ;;  %v3041_v35 = vpop.f32.mrb[12].mxu1  ;;  %v561_v36 = vadd.f32 %v3036_v26, %v560_v29 }
 0x288   :  { %v532_v37 = vpop.f32.mrb[13].mxu1  ;;  %v585_v44 = vmul.f32 %v3041_v35, %v3041_v35 }
 0x289   :  { %v562_v39 = vadd.f32 %v561_v36, %v532_v37  ;;  %v584_v40 = vmul.f32 %v532_v37, %v532_v37  ;;  %v598_v43 = vadd.f32 %v597_v34, %v583_v32 }
 0x28b   :  { %v599_v46 = vadd.f32 %v598_v43, %v584_v40  ;;  %v3046_v47 = vpop.f32.mrb[14].mxu1  ;;  %v563_v49 = vadd.f32 %v3041_v35, %v562_v39 }
 0x28c   :  { %v542_v50 = vpop.f32.mrb[15].mxu1  ;;  %v587_v58 = vmul.f32 %v3046_v47, %v3046_v47 }
 0x28d   :  { %v564_v53 = vadd.f32 %v563_v49, %v542_v50  ;;  %v586_v55 = vmul.f32 %v542_v50, %v542_v50  ;;  %v600_v56 = vadd.f32 %v599_v46, %v585_v44 }
 0x28f   :  { %v565_v59 = vadd.f32 %v3046_v47, %v564_v53  ;;  %v601_v62 = vadd.f32 %v600_v56, %v586_v55 }
 0x291   :  { %v566_v63 = vrot.slane %v565_v59, 4  ;;  %v602_v0 = vadd.f32 %v601_v62, %v587_v58 }
 0x293   :  { %v567_v42 = vadd.f32 %v566_v63, %v565_v59  ;;  %v603_v2 = vrot.slane %v602_v0, 4 }
 0x295   :  { %v568_v48 = vrot.slane %v567_v42, 2  ;;  %v604_v4 = vadd.f32 %v603_v2, %v602_v0 }
 0x297   :  { %v569_v7 = vadd.f32 %v568_v48, %v567_v42  ;;  %v605_v8 = vrot.slane %v604_v4, 2 }
 0x299   :  { %v570_v54 = vrot.slane %v569_v7, 1  ;;  %v606_v9 = vadd.f32 %v605_v8, %v604_v4 }
 0x29b   :  { %v571_v61 = vadd.f32 %v570_v54, %v569_v7  ;;  %v607_v10 = vrot.slane %v606_v9, 1 }
 0x29d   :  { %v608_v33 = vadd.f32 %v607_v10, %v606_v9  ;;  %v609_v41 = vmul.f32 0.0078125, %v571_v61 }
 0x29f   :  { %v610_v11 = vmul.f32 0.0078125, %v608_v33  ;;  %v611_v52 = vmul.f32 %v609_v41, %v609_v41  ;;  %v964_v33 = vld [vmem:[#allocation4 + $0x200] sm:$0xff] }
 0x2a1   :  { %v612_v13 = vsub.f32 %v610_v11, %v611_v52  ;;  %v966_v52 = vld [vmem:[#allocation4 + $0x210] sm:$0xff] }
 0x2a3   :  { %v613_v16 = vmax.f32 %v612_v13, 0.0  ;;  %v967_v13 = vld [vmem:[#allocation4 + $0x218] sm:$0xff] }
 0x2a5   :  { %v616_v17 = vadd.f32 1e-05, %v613_v16  ;;  %v2563_v16 = vpack.c.bf16 %v967_v13, %v966_v52 }
 0x2a7   :  { %2680 = vrsqrt.f32 %v616_v17  ;;  %v968_v17 = vld [vmem:[#allocation4 + $0x220] sm:$0xff] }
 0x2b1   :  { %v2681_v19 = vpop.eup %2680 }
 0x2b2   :  { %v618_v15 = vmul.f32 %v2681_v19, %v614_v18  ;;  %v969_v18 = vld [vmem:[#allocation4 + $0x228] sm:$0xff] }
 0x2b3   :  { %v2567_v19 = vpack.c.bf16 %v969_v18, %v968_v17 }
 0x2b4   :  { %v619_v22 = vmul.f32 %v618_v15, %v609_v41  ;;  %v624_v23 = vrot.slane %v618_v15, %v2968_v38  ;;  %v965_v41 = vld [vmem:[#allocation4 + $0x208] sm:$0xff]  ;;  %v970_v15 = vld [vmem:[#allocation4 + $0x230] sm:$0xff] }
 0x2b5   :  { %v2559_v11 = vpack.c.bf16 %v965_v41, %v964_v33 }
 0x2b6   :  { %v620_v60 = vsub.f32 %v615_v20, %v619_v22  ;;  %v639_v3 = vmul.f32 %v624_v23, %v542_v50  ;;  %v625_v25 = vmul.f32 %v624_v23, %v2991_v45  ;;  %v626_v27 = vmul.f32 %v2987_v1, %v624_v23  ;;  %v971_v20 = vld [vmem:[#allocation4 + $0x238] sm:$0xff] }
 0x2b7   :  { %v627_v29 = vmul.f32 %v624_v23, %v2999_v5  ;;  %v628_v30 = vmul.f32 %v2997_v51, %v624_v23  ;;  %v629_v31 = vmul.f32 %v624_v23, %v3009_v6  ;;  %v630_v32 = vmul.f32 %v3006_v57, %v624_v23  ;;  %2560 = vmatprep.subr.bf16.mxu0 %v2559_v11 }
 0x2b8   :  { %v644_v34 = vrot.slane %v620_v60, %v2968_v38  ;;  %v631_v36 = vmul.f32 %v624_v23, %v3019_v14  ;;  %v632_v39 = vmul.f32 %v3016_v12, %v624_v23  ;;  %v633_v40 = vmul.f32 %v624_v23, %v3029_v21  ;;  %2562 = vmatpush3.bf16.msra.mxu0 %v2559_v11  ;;  %v973_v60 = vld [vmem:[#allocation4 + $0x248] sm:$0xff] }
 0x2b9   :  { %v634_v45 = vmul.f32 %v3026_v24, %v624_v23  ;;  %v635_v43 = vmul.f32 %v624_v23, %v522_v28  ;;  %v636_v1 = vmul.f32 %v3036_v26, %v624_v23  ;;  %v637_v5 = vmul.f32 %v624_v23, %v532_v37  ;;  %2564 = vmatprep.subr.bf16.mxu0 %v2563_v16 }
 0x2ba   :  { %v645_v44 = vadd.f32 %v644_v34, %v625_v25  ;;  %v646_v51 = vadd.f32 %v644_v34, %v626_v27  ;;  %v647_v46 = vadd.f32 %v644_v34, %v627_v29  ;;  %v648_v6 = vadd.f32 %v644_v34, %v628_v30  ;;  %v974_v25 = vld [vmem:[#allocation4 + $0x250] sm:$0xff]  ;;  %v975_v27 = vld [vmem:[#allocation4 + $0x258] sm:$0xff]  ;;  %v976_v29 = vld [vmem:[#allocation4 + $0x260] sm:$0xff] }
 0x2bb   :  { %v649_v49 = vadd.f32 %v644_v34, %v629_v31  ;;  %v650_v57 = vadd.f32 %v644_v34, %v630_v32  ;;  %v651_v50 = vadd.f32 %v644_v34, %v631_v36  ;;  %v652_v53 = vadd.f32 %v644_v34, %v632_v39  ;;  %v977_v31 = vld [vmem:[#allocation4 + $0x268] sm:$0xff]  ;;  %v979_v36 = vld [vmem:[#allocation4 + $0x278] sm:$0xff] }
 0x2bc   :  { %v661_v55 = vmax.f32 %v645_v44, 0.0  ;;  %v662_v14 = vmax.f32 %v646_v51, 0.0  ;;  %v663_v56 = vmax.f32 %v647_v46, 0.0  ;;  %v653_v12 = vadd.f32 %v644_v34, %v633_v40  ;;  %2566 = vmatpush3.bf16.msra.mxu0 %v2563_v16 }
 0x2bd   :  { %v654_v21 = vadd.f32 %v644_v34, %v634_v45  ;;  %v655_v58 = vadd.f32 %v644_v34, %v635_v43  ;;  %v656_v24 = vadd.f32 %v644_v34, %v636_v1  ;;  %v657_v28 = vadd.f32 %v644_v34, %v637_v5  ;;  %2568 = vmatprep.subr.bf16.mxu0 %v2567_v19 }
 0x2be   :  { %2271 = vmatprep.mubr.f32.mxu1 %v661_v55  ;;  %v638_v26 = vmul.f32 %v3041_v35, %v624_v23  ;;  %v659_v37 = vadd.f32 %v644_v34, %v639_v3  ;;  %v640_v59 = vmul.f32 %v3046_v47, %v624_v23  ;;  %v664_v62 = vmax.f32 %v648_v6, 0.0  ;;  %v972_v23 = vld [vmem:[#allocation4 + $0x240] sm:$0xff] }
 0x2bf   :  { %2272 = vmatmul.mubr.f32.vlgmr.msra.gmra.mrb[16].mxu1 %v662_v14  ;;  %v665_v42 = vmax.f32 %v649_v49, 0.0  ;;  %v666_v2 = vmax.f32 %v650_v57, 0.0  ;;  %v667_v48 = vmax.f32 %v651_v50, 0.0  ;;  %v668_v4 = vmax.f32 %v652_v53, 0.0 }
 0x2c0   :  { %2274 = vmatprep.mubr.f32.mxu1 %v663_v56  ;;  %v658_v63 = vadd.f32 %v644_v34, %v638_v26  ;;  %v660_v0 = vadd.f32 %v644_v34, %v640_v59  ;;  %v669_v7 = vmax.f32 %v653_v12, 0.0  ;;  %v670_v8 = vmax.f32 %v654_v21, 0.0  ;;  %2570 = vmatpush3.bf16.msra.mxu0 %v2567_v19  ;;  %v978_v34 = vld [vmem:[#allocation4 + $0x270] sm:$0xff] }
 0x2c1   :  { %v671_v35 = vmax.f32 %v655_v58, 0.0  ;;  %v672_v47 = vmax.f32 %v656_v24, 0.0  ;;  %v673_v54 = vmax.f32 %v657_v28, 0.0  ;;  %v675_v61 = vmax.f32 %v659_v37, 0.0 }
 0x2c2   :  { %v674_v9 = vmax.f32 %v658_v63, 0.0  ;;  %v676_v10 = vmax.f32 %v660_v0, 0.0  ;;  %v2571_v22 = vpack.c.bf16 %v971_v20, %v970_v15  ;;  %v2575_v3 = vpack.c.bf16 %v973_v60, %v972_v23 }
 0x2c3   :  { %2275 = vmatmul.mubr.f32.gmra.mrb[18].mxu1 %v664_v62  ;;  %v2579_v30 = vpack.c.bf16 %v975_v27, %v974_v25  ;;  %v2583_v32 = vpack.c.bf16 %v977_v31, %v976_v29  ;;  %v2587_v39 = vpack.c.bf16 %v979_v36, %v978_v34 }
 0x2c4   :  { %2277 = vmatprep.mubr.f32.mxu1 %v665_v42  ;;  %2572 = vmatprep.subr.bf16.mxu0 %v2571_v22 }
 0x2c5   :  { %2574 = vmatpush3.bf16.msra.mxu0 %v2571_v22 }
 0x2c6   :  { %2576 = vmatprep.subr.bf16.mxu0 %v2575_v3 }
 0x2c7   :  { %2278 = vmatmul.mubr.f32.gmra.mrb[20].mxu1 %v666_v2 }
 0x2c8   :  { %2280 = vmatprep.mubr.f32.mxu1 %v667_v48 }
 0x2c9   :  { %2578 = vmatpush3.bf16.msra.mxu0 %v2575_v3 }
 0x2ca   :  { %2580 = vmatprep.subr.bf16.mxu0 %v2579_v30 }
 0x2cb   :  { %2281 = vmatmul.mubr.f32.gmra.mrb[22].mxu1 %v668_v4 }
 0x2cc   :  { %2283 = vmatprep.mubr.f32.mxu1 %v669_v7 }
 0x2cd   :  { %2582 = vmatpush3.bf16.msra.mxu0 %v2579_v30 }
 0x2ce   :  { %2584 = vmatprep.subr.bf16.mxu0 %v2583_v32 }
 0x2cf   :  { %2284 = vmatmul.mubr.f32.gmra.mrb[24].mxu1 %v670_v8 }
 0x2d0   :  { %2286 = vmatprep.mubr.f32.mxu1 %v671_v35 }
 0x2d1   :  { %2586 = vmatpush3.bf16.msra.mxu0 %v2583_v32 }
 0x2d2   :  { %2588 = vmatprep.subr.bf16.mxu0 %v2587_v39 }
 0x2d3   :  { %2287 = vmatmul.mubr.f32.gmra.mrb[26].mxu1 %v672_v47 }
 0x2d4   :  { %2289 = vmatprep.mubr.f32.mxu1 %v673_v54 }
 0x2d5   :  { %2590 = vmatpush3.bf16.msra.mxu0 %v2587_v39 }
 0x2d7   :  { %2290 = vmatmul.mubr.f32.gmra.mrb[28].mxu1 %v674_v9 }
 0x2d8   :  { %2292 = vmatprep.mubr.f32.mxu1 %v675_v61 }
 0x2db   :  { %2293 = vmatmul.mubr.f32.gmra.mrb[30].mxu1 %v676_v10 }
 0x392   :  { %v3067_v40 = vpop.f32.mrb[16].mxu1 }
 0x393   :  { %v860_v45 = vmul.f32 %v3067_v40, %v3067_v40  ;;  %v3071_v43 = vpop.f32.mrb[17].mxu1 }
 0x394   :  { %v838_v1 = vadd.f32 %v3067_v40, %v3071_v43  ;;  %v859_v5 = vmul.f32 %v3071_v43, %v3071_v43 }
 0x396   :  { %v875_v44 = vadd.f32 %v860_v45, %v859_v5  ;;  %v3077_v51 = vpop.f32.mrb[18].mxu1 }
 0x397   :  { %v3079_v46 = vpop.f32.mrb[19].mxu1  ;;  %v862_v57 = vmul.f32 %v3077_v51, %v3077_v51 }
 0x398   :  { %v839_v6 = vadd.f32 %v838_v1, %v3079_v46  ;;  %v861_v49 = vmul.f32 %v3079_v46, %v3079_v46 }
 0x39a   :  { %v876_v50 = vadd.f32 %v875_v44, %v861_v49  ;;  %v3086_v53 = vpop.f32.mrb[20].mxu1  ;;  %v840_v55 = vadd.f32 %v3077_v51, %v839_v6 }
 0x39b   :  { %v3089_v14 = vpop.f32.mrb[21].mxu1  ;;  %v864_v58 = vmul.f32 %v3086_v53, %v3086_v53 }
 0x39c   :  { %v841_v56 = vadd.f32 %v840_v55, %v3089_v14  ;;  %v863_v12 = vmul.f32 %v3089_v14, %v3089_v14  ;;  %v877_v21 = vadd.f32 %v876_v50, %v862_v57 }
 0x39e   :  { %v878_v24 = vadd.f32 %v877_v21, %v863_v12  ;;  %v3096_v28 = vpop.f32.mrb[22].mxu1  ;;  %v842_v26 = vadd.f32 %v3086_v53, %v841_v56 }
 0x39f   :  { %v3099_v37 = vpop.f32.mrb[23].mxu1  ;;  %v866_v0 = vmul.f32 %v3096_v28, %v3096_v28 }
 0x3a0   :  { %v843_v59 = vadd.f32 %v842_v26, %v3099_v37  ;;  %v865_v62 = vmul.f32 %v3099_v37, %v3099_v37  ;;  %v879_v63 = vadd.f32 %v878_v24, %v864_v58 }
 0x3a2   :  { %v880_v42 = vadd.f32 %v879_v63, %v865_v62  ;;  %v3106_v2 = vpop.f32.mrb[24].mxu1  ;;  %v844_v48 = vadd.f32 %v3096_v28, %v843_v59  ;;  %v901_v63 = vld [vmem:[#allocation6 + $0x4] sm:$0x1] }
 0x3a3   :  { %v3109_v4 = vpop.f32.mrb[25].mxu1  ;;  %v868_v47 = vmul.f32 %v3106_v2, %v3106_v2 }
 0x3a4   :  { %v845_v7 = vadd.f32 %v844_v48, %v3109_v4  ;;  %v867_v8 = vmul.f32 %v3109_v4, %v3109_v4  ;;  %v881_v35 = vadd.f32 %v880_v42, %v866_v0  ;;  %v902_v48 = vld [vmem:[#allocation6 + $0x5] sm:$0x1] }
 0x3a6   :  { %v882_v54 = vadd.f32 %v881_v35, %v867_v8  ;;  %v3116_v9 = vpop.f32.mrb[26].mxu1  ;;  %v846_v61 = vadd.f32 %v3106_v2, %v845_v7 }
 0x3a7   :  { %v809_v10 = vpop.f32.mrb[27].mxu1  ;;  %v870_v52 = vmul.f32 %v3116_v9, %v3116_v9 }
 0x3a8   :  { %v847_v33 = vadd.f32 %v846_v61, %v809_v10  ;;  %v869_v41 = vmul.f32 %v809_v10, %v809_v10  ;;  %v883_v11 = vadd.f32 %v882_v54, %v868_v47 }
 0x3aa   :  { %v884_v13 = vadd.f32 %v883_v11, %v869_v41  ;;  %v3121_v16 = vpop.f32.mrb[28].mxu1  ;;  %v848_v17 = vadd.f32 %v3116_v9, %v847_v33 }
 0x3ab   :  { %v819_v18 = vpop.f32.mrb[29].mxu1  ;;  %v872_v22 = vmul.f32 %v3121_v16, %v3121_v16 }
 0x3ac   :  { %v849_v19 = vadd.f32 %v848_v17, %v819_v18  ;;  %v871_v15 = vmul.f32 %v819_v18, %v819_v18  ;;  %v885_v20 = vadd.f32 %v884_v13, %v870_v52 }
 0x3ae   :  { %v886_v23 = vadd.f32 %v885_v20, %v871_v15  ;;  %v3126_v60 = vpop.f32.mrb[30].mxu1  ;;  %v850_v3 = vadd.f32 %v3121_v16, %v849_v19 }
 0x3af   :  { %v829_v25 = vpop.f32.mrb[31].mxu1  ;;  %v874_v31 = vmul.f32 %v3126_v60, %v3126_v60 }
 0x3b0   :  { %v851_v27 = vadd.f32 %v850_v3, %v829_v25  ;;  %v873_v29 = vmul.f32 %v829_v25, %v829_v25  ;;  %v887_v30 = vadd.f32 %v886_v23, %v872_v22 }
 0x3b2   :  { %v852_v32 = vadd.f32 %v3126_v60, %v851_v27  ;;  %v888_v34 = vadd.f32 %v887_v30, %v873_v29 }
 0x3b4   :  { %v853_v36 = vrot.slane %v852_v32, 4  ;;  %v889_v39 = vadd.f32 %v888_v34, %v874_v31 }
 0x3b6   :  { %v854_v45 = vadd.f32 %v853_v36, %v852_v32  ;;  %v890_v1 = vrot.slane %v889_v39, 4 }
 0x3b8   :  { %v855_v5 = vrot.slane %v854_v45, 2  ;;  %v891_v44 = vadd.f32 %v890_v1, %v889_v39 }
 0x3ba   :  { %v856_v6 = vadd.f32 %v855_v5, %v854_v45  ;;  %v892_v49 = vrot.slane %v891_v44, 2 }
 0x3bc   :  { %v857_v57 = vrot.slane %v856_v6, 1  ;;  %v893_v50 = vadd.f32 %v892_v49, %v891_v44 }
 0x3be   :  { %v858_v55 = vadd.f32 %v857_v57, %v856_v6  ;;  %v894_v56 = vrot.slane %v893_v50, 1 }
 0x3c0   :  { %v895_v12 = vadd.f32 %v894_v56, %v893_v50  ;;  %v896_v21 = vmul.f32 0.0078125, %v858_v55 }
 0x3c2   :  { %v897_v58 = vmul.f32 0.0078125, %v895_v12  ;;  %v898_v24 = vmul.f32 %v896_v21, %v896_v21  ;;  %v1251_v12 = vld [vmem:[#allocation4 + $0x280] sm:$0xff] }
 0x3c4   :  { %v899_v26 = vsub.f32 %v897_v58, %v898_v24  ;;  %v1253_v24 = vld [vmem:[#allocation4 + $0x290] sm:$0xff] }
 0x3c6   :  { %v900_v59 = vmax.f32 %v899_v26, 0.0  ;;  %v1254_v26 = vld [vmem:[#allocation4 + $0x298] sm:$0xff] }
 0x3c8   :  { %v903_v62 = vadd.f32 1e-05, %v900_v59  ;;  %v2595_v59 = vpack.c.bf16 %v1254_v26, %v1253_v24 }
 0x3ca   :  { %2682 = vrsqrt.f32 %v903_v62  ;;  %v1255_v62 = vld [vmem:[#allocation4 + $0x2a0] sm:$0xff] }
 0x3d4   :  { %v2683_v0 = vpop.eup %2682 }
 0x3d5   :  { %v905_v42 = vmul.f32 %v2683_v0, %v901_v63  ;;  %v1256_v63 = vld [vmem:[#allocation4 + $0x2a8] sm:$0xff] }
 0x3d6   :  { %v2599_v0 = vpack.c.bf16 %v1256_v63, %v1255_v62 }
 0x3d7   :  { %v906_v7 = vmul.f32 %v905_v42, %v896_v21  ;;  %v911_v8 = vrot.slane %v905_v42, %v2968_v38  ;;  %v1252_v21 = vld [vmem:[#allocation4 + $0x288] sm:$0xff]  ;;  %v1257_v42 = vld [vmem:[#allocation4 + $0x2b0] sm:$0xff] }
 0x3d8   :  { %v2591_v58 = vpack.c.bf16 %v1252_v21, %v1251_v12 }
 0x3d9   :  { %v907_v35 = vsub.f32 %v902_v48, %v906_v7  ;;  %v926_v47 = vmul.f32 %v911_v8, %v829_v25  ;;  %v912_v54 = vmul.f32 %v911_v8, %v3071_v43  ;;  %v913_v61 = vmul.f32 %v3067_v40, %v911_v8  ;;  %v1258_v48 = vld [vmem:[#allocation4 + $0x2b8] sm:$0xff] }
 0x3da   :  { %v914_v33 = vmul.f32 %v911_v8, %v3079_v46  ;;  %v915_v41 = vmul.f32 %v3077_v51, %v911_v8  ;;  %v916_v11 = vmul.f32 %v911_v8, %v3089_v14  ;;  %v917_v52 = vmul.f32 %v3086_v53, %v911_v8  ;;  %2592 = vmatprep.subr.bf16.mxu1 %v2591_v58 }
 0x3db   :  { %v931_v13 = vrot.slane %v907_v35, %v2968_v38  ;;  %v918_v17 = vmul.f32 %v911_v8, %v3099_v37  ;;  %v919_v19 = vmul.f32 %v3096_v28, %v911_v8  ;;  %v920_v15 = vmul.f32 %v911_v8, %v3109_v4  ;;  %2594 = vmatpush3.bf16.msra.mxu1 %v2591_v58  ;;  %v1260_v35 = vld [vmem:[#allocation4 + $0x2c8] sm:$0xff] }
 0x3dc   :  { %v921_v43 = vmul.f32 %v3106_v2, %v911_v8  ;;  %v922_v20 = vmul.f32 %v911_v8, %v809_v10  ;;  %v923_v40 = vmul.f32 %v3116_v9, %v911_v8  ;;  %v924_v46 = vmul.f32 %v911_v8, %v819_v18  ;;  %2596 = vmatprep.subr.bf16.mxu1 %v2595_v59 }
 0x3dd   :  { %v932_v22 = vadd.f32 %v931_v13, %v912_v54  ;;  %v933_v51 = vadd.f32 %v931_v13, %v913_v61  ;;  %v934_v23 = vadd.f32 %v931_v13, %v914_v33  ;;  %v935_v14 = vadd.f32 %v931_v13, %v915_v41  ;;  %v1261_v54 = vld [vmem:[#allocation4 + $0x2d0] sm:$0xff]  ;;  %v1262_v61 = vld [vmem:[#allocation4 + $0x2d8] sm:$0xff]  ;;  %v1263_v33 = vld [vmem:[#allocation4 + $0x2e0] sm:$0xff] }
 0x3de   :  { %v936_v3 = vadd.f32 %v931_v13, %v916_v11  ;;  %v937_v53 = vadd.f32 %v931_v13, %v917_v52  ;;  %v938_v25 = vadd.f32 %v931_v13, %v918_v17  ;;  %v939_v27 = vadd.f32 %v931_v13, %v919_v19  ;;  %v1264_v11 = vld [vmem:[#allocation4 + $0x2e8] sm:$0xff]  ;;  %v1266_v17 = vld [vmem:[#allocation4 + $0x2f8] sm:$0xff] }
 0x3df   :  { %v948_v29 = vmax.f32 %v932_v22, 0.0  ;;  %v949_v37 = vmax.f32 %v933_v51, 0.0  ;;  %v950_v30 = vmax.f32 %v934_v23, 0.0  ;;  %v940_v28 = vadd.f32 %v931_v13, %v920_v15  ;;  %2598 = vmatpush3.bf16.msra.mxu1 %v2595_v59 }
 0x3e0   :  { %v941_v4 = vadd.f32 %v931_v13, %v921_v43  ;;  %v942_v31 = vadd.f32 %v931_v13, %v922_v20  ;;  %v943_v2 = vadd.f32 %v931_v13, %v923_v40  ;;  %v944_v10 = vadd.f32 %v931_v13, %v924_v46  ;;  %2600 = vmatprep.subr.bf16.mxu1 %v2599_v0 }
 0x3e1   :  { %2327 = vmatprep.mubr.f32.mxu0 %v948_v29  ;;  %v925_v9 = vmul.f32 %v3121_v16, %v911_v8  ;;  %v946_v18 = vadd.f32 %v931_v13, %v926_v47  ;;  %v927_v32 = vmul.f32 %v3126_v60, %v911_v8  ;;  %v951_v34 = vmax.f32 %v935_v14, 0.0  ;;  %v1259_v8 = vld [vmem:[#allocation4 + $0x2c0] sm:$0xff] }
 0x3e2   :  { %2328 = vmatmul.mubr.f32.vlgmr.msra.gmra.mrb[32].mxu0 %v949_v37  ;;  %v952_v45 = vmax.f32 %v936_v3, 0.0  ;;  %v953_v1 = vmax.f32 %v937_v53, 0.0  ;;  %v954_v5 = vmax.f32 %v938_v25, 0.0  ;;  %v955_v44 = vmax.f32 %v939_v27, 0.0 }
 0x3e3   :  { %2330 = vmatprep.mubr.f32.mxu0 %v950_v30  ;;  %v945_v36 = vadd.f32 %v931_v13, %v925_v9  ;;  %v947_v39 = vadd.f32 %v931_v13, %v927_v32  ;;  %v956_v6 = vmax.f32 %v940_v28, 0.0  ;;  %v957_v49 = vmax.f32 %v941_v4, 0.0  ;;  %2602 = vmatpush3.bf16.msra.mxu1 %v2599_v0  ;;  %v1265_v13 = vld [vmem:[#allocation4 + $0x2f0] sm:$0xff] }
 0x3e4   :  { %v958_v16 = vmax.f32 %v942_v31, 0.0  ;;  %v959_v60 = vmax.f32 %v943_v2, 0.0  ;;  %v960_v57 = vmax.f32 %v944_v10, 0.0  ;;  %v962_v55 = vmax.f32 %v946_v18, 0.0 }
 0x3e5   :  { %v961_v50 = vmax.f32 %v945_v36, 0.0  ;;  %v963_v56 = vmax.f32 %v947_v39, 0.0  ;;  %v2603_v7 = vpack.c.bf16 %v1258_v48, %v1257_v42  ;;  %v2607_v47 = vpack.c.bf16 %v1260_v35, %v1259_v8 }
 0x3e6   :  { %2331 = vmatmul.mubr.f32.gmra.mrb[34].mxu0 %v951_v34  ;;  %v2611_v41 = vpack.c.bf16 %v1262_v61, %v1261_v54  ;;  %v2615_v52 = vpack.c.bf16 %v1264_v11, %v1263_v33  ;;  %v2619_v19 = vpack.c.bf16 %v1266_v17, %v1265_v13 }
 0x3e7   :  { %2333 = vmatprep.mubr.f32.mxu0 %v952_v45  ;;  %2604 = vmatprep.subr.bf16.mxu1 %v2603_v7 }
 0x3e8   :  { %2606 = vmatpush3.bf16.msra.mxu1 %v2603_v7 }
 0x3e9   :  { %2608 = vmatprep.subr.bf16.mxu1 %v2607_v47 }
 0x3ea   :  { %2334 = vmatmul.mubr.f32.gmra.mrb[36].mxu0 %v953_v1 }
 0x3eb   :  { %2336 = vmatprep.mubr.f32.mxu0 %v954_v5 }
 0x3ec   :  { %2610 = vmatpush3.bf16.msra.mxu1 %v2607_v47 }
 0x3ed   :  { %2612 = vmatprep.subr.bf16.mxu1 %v2611_v41 }
 0x3ee   :  { %2337 = vmatmul.mubr.f32.gmra.mrb[38].mxu0 %v955_v44 }
 0x3ef   :  { %2339 = vmatprep.mubr.f32.mxu0 %v956_v6 }
 0x3f0   :  { %2614 = vmatpush3.bf16.msra.mxu1 %v2611_v41 }
 0x3f1   :  { %2616 = vmatprep.subr.bf16.mxu1 %v2615_v52 }
 0x3f2   :  { %2340 = vmatmul.mubr.f32.gmra.mrb[40].mxu0 %v957_v49 }
 0x3f3   :  { %2342 = vmatprep.mubr.f32.mxu0 %v958_v16 }
 0x3f4   :  { %2618 = vmatpush3.bf16.msra.mxu1 %v2615_v52 }
 0x3f5   :  { %2620 = vmatprep.subr.bf16.mxu1 %v2619_v19 }
 0x3f6   :  { %2343 = vmatmul.mubr.f32.gmra.mrb[42].mxu0 %v959_v60 }
 0x3f7   :  { %2345 = vmatprep.mubr.f32.mxu0 %v960_v57 }
 0x3f8   :  { %2622 = vmatpush3.bf16.msra.mxu1 %v2619_v19 }
 0x3fa   :  { %2346 = vmatmul.mubr.f32.gmra.mrb[44].mxu0 %v961_v50 }
 0x3fb   :  { %2348 = vmatprep.mubr.f32.mxu0 %v962_v55 }
 0x3fe   :  { %2349 = vmatmul.mubr.f32.gmra.mrb[46].mxu0 %v963_v56 }
 0x4b5   :  { %v3147_v15 = vpop.f32.mrb[32].mxu0 }
 0x4b6   :  { %v1147_v43 = vmul.f32 %v3147_v15, %v3147_v15  ;;  %v3151_v20 = vpop.f32.mrb[33].mxu0 }
 0x4b7   :  { %v1125_v40 = vadd.f32 %v3147_v15, %v3151_v20  ;;  %v1146_v46 = vmul.f32 %v3151_v20, %v3151_v20 }
 0x4b9   :  { %v1162_v22 = vadd.f32 %v1147_v43, %v1146_v46  ;;  %v3157_v51 = vpop.f32.mrb[34].mxu0 }
 0x4ba   :  { %v3159_v23 = vpop.f32.mrb[35].mxu0  ;;  %v1149_v53 = vmul.f32 %v3157_v51, %v3157_v51 }
 0x4bb   :  { %v1126_v14 = vadd.f32 %v1125_v40, %v3159_v23  ;;  %v1148_v3 = vmul.f32 %v3159_v23, %v3159_v23 }
 0x4bd   :  { %v1163_v25 = vadd.f32 %v1162_v22, %v1148_v3  ;;  %v3166_v27 = vpop.f32.mrb[36].mxu0  ;;  %v1127_v29 = vadd.f32 %v3157_v51, %v1126_v14 }
 0x4be   :  { %v3169_v37 = vpop.f32.mrb[37].mxu0  ;;  %v1151_v31 = vmul.f32 %v3166_v27, %v3166_v27 }
 0x4bf   :  { %v1128_v30 = vadd.f32 %v1127_v29, %v3169_v37  ;;  %v1150_v28 = vmul.f32 %v3169_v37, %v3169_v37  ;;  %v1164_v4 = vadd.f32 %v1163_v25, %v1149_v53 }
 0x4c1   :  { %v1165_v2 = vadd.f32 %v1164_v4, %v1150_v28  ;;  %v3176_v10 = vpop.f32.mrb[38].mxu0  ;;  %v1129_v9 = vadd.f32 %v3166_v27, %v1128_v30 }
 0x4c2   :  { %v3179_v18 = vpop.f32.mrb[39].mxu0  ;;  %v1153_v39 = vmul.f32 %v3176_v10, %v3176_v10 }
 0x4c3   :  { %v1130_v32 = vadd.f32 %v1129_v9, %v3179_v18  ;;  %v1152_v34 = vmul.f32 %v3179_v18, %v3179_v18  ;;  %v1166_v36 = vadd.f32 %v1165_v2, %v1151_v31 }
 0x4c5   :  { %v1167_v45 = vadd.f32 %v1166_v36, %v1152_v34  ;;  %v3186_v1 = vpop.f32.mrb[40].mxu0  ;;  %v1131_v5 = vadd.f32 %v3176_v10, %v1130_v32  ;;  %v1188_v36 = vld [vmem:[#allocation6 + $0x6] sm:$0x1] }
 0x4c6   :  { %v3189_v44 = vpop.f32.mrb[41].mxu0  ;;  %v1155_v60 = vmul.f32 %v3186_v1, %v3186_v1 }
 0x4c7   :  { %v1132_v6 = vadd.f32 %v1131_v5, %v3189_v44  ;;  %v1154_v49 = vmul.f32 %v3189_v44, %v3189_v44  ;;  %v1168_v16 = vadd.f32 %v1167_v45, %v1153_v39  ;;  %v1189_v5 = vld [vmem:[#allocation6 + $0x7] sm:$0x1] }
 0x4c9   :  { %v1169_v57 = vadd.f32 %v1168_v16, %v1154_v49  ;;  %v3196_v50 = vpop.f32.mrb[42].mxu0  ;;  %v1133_v55 = vadd.f32 %v3186_v1, %v1132_v6 }
 0x4ca   :  { %v1096_v56 = vpop.f32.mrb[43].mxu0  ;;  %v1157_v24 = vmul.f32 %v3196_v50, %v3196_v50 }
 0x4cb   :  { %v1134_v12 = vadd.f32 %v1133_v55, %v1096_v56  ;;  %v1156_v21 = vmul.f32 %v1096_v56, %v1096_v56  ;;  %v1170_v58 = vadd.f32 %v1169_v57, %v1155_v60 }
 0x4cd   :  { %v1171_v26 = vadd.f32 %v1170_v58, %v1156_v21  ;;  %v3201_v59 = vpop.f32.mrb[44].mxu0  ;;  %v1135_v62 = vadd.f32 %v3196_v50, %v1134_v12 }
 0x4ce   :  { %v1106_v63 = vpop.f32.mrb[45].mxu0  ;;  %v1159_v7 = vmul.f32 %v3201_v59, %v3201_v59 }
 0x4cf   :  { %v1136_v0 = vadd.f32 %v1135_v62, %v1106_v63  ;;  %v1158_v42 = vmul.f32 %v1106_v63, %v1106_v63  ;;  %v1172_v48 = vadd.f32 %v1171_v26, %v1157_v24 }
 0x4d1   :  { %v1173_v8 = vadd.f32 %v1172_v48, %v1158_v42  ;;  %v3206_v35 = vpop.f32.mrb[46].mxu0  ;;  %v1137_v47 = vadd.f32 %v3201_v59, %v1136_v0 }
 0x4d2   :  { %v1116_v54 = vpop.f32.mrb[47].mxu0  ;;  %v1161_v11 = vmul.f32 %v3206_v35, %v3206_v35 }
 0x4d3   :  { %v1138_v61 = vadd.f32 %v1137_v47, %v1116_v54  ;;  %v1160_v33 = vmul.f32 %v1116_v54, %v1116_v54  ;;  %v1174_v41 = vadd.f32 %v1173_v8, %v1159_v7 }
 0x4d5   :  { %v1139_v52 = vadd.f32 %v3206_v35, %v1138_v61  ;;  %v1175_v13 = vadd.f32 %v1174_v41, %v1160_v33 }
 0x4d7   :  { %v1140_v17 = vrot.slane %v1139_v52, 4  ;;  %v1176_v19 = vadd.f32 %v1175_v13, %v1161_v11 }
 0x4d9   :  { %v1141_v43 = vadd.f32 %v1140_v17, %v1139_v52  ;;  %v1177_v40 = vrot.slane %v1176_v19, 4 }
 0x4db   :  { %v1142_v46 = vrot.slane %v1141_v43, 2  ;;  %v1178_v22 = vadd.f32 %v1177_v40, %v1176_v19 }
 0x4dd   :  { %v1143_v14 = vadd.f32 %v1142_v46, %v1141_v43  ;;  %v1179_v3 = vrot.slane %v1178_v22, 2 }
 0x4df   :  { %v1144_v53 = vrot.slane %v1143_v14, 1  ;;  %v1180_v25 = vadd.f32 %v1179_v3, %v1178_v22 }
 0x4e1   :  { %v1145_v29 = vadd.f32 %v1144_v53, %v1143_v14  ;;  %v1181_v30 = vrot.slane %v1180_v25, 1 }
 0x4e3   :  { %v1182_v28 = vadd.f32 %v1181_v30, %v1180_v25  ;;  %v1183_v4 = vmul.f32 0.0078125, %v1145_v29 }
 0x4e5   :  { %v1184_v31 = vmul.f32 0.0078125, %v1182_v28  ;;  %v1185_v2 = vmul.f32 %v1183_v4, %v1183_v4  ;;  %v1538_v28 = vld [vmem:[#allocation4 + $0x300] sm:$0xff] }
 0x4e7   :  { %v1186_v9 = vsub.f32 %v1184_v31, %v1185_v2  ;;  %v1540_v2 = vld [vmem:[#allocation4 + $0x310] sm:$0xff] }
 0x4e9   :  { %v1187_v32 = vmax.f32 %v1186_v9, 0.0  ;;  %v1541_v9 = vld [vmem:[#allocation4 + $0x318] sm:$0xff] }
 0x4eb   :  { %v1190_v34 = vadd.f32 1e-05, %v1187_v32  ;;  %v2627_v32 = vpack.c.bf16 %v1541_v9, %v1540_v2 }
 0x4ed   :  { %2684 = vrsqrt.f32 %v1190_v34  ;;  %v1542_v34 = vld [vmem:[#allocation4 + $0x320] sm:$0xff] }
 0x4f7   :  { %v2685_v39 = vpop.eup %2684 }
 0x4f8   :  { %v1192_v45 = vmul.f32 %v2685_v39, %v1188_v36  ;;  %v1543_v36 = vld [vmem:[#allocation4 + $0x328] sm:$0xff] }
 0x4f9   :  { %v2631_v39 = vpack.c.bf16 %v1543_v36, %v1542_v34 }
 0x4fa   :  { %v1193_v6 = vmul.f32 %v1192_v45, %v1183_v4  ;;  %v1198_v49 = vrot.slane %v1192_v45, %v2968_v38  ;;  %v1539_v4 = vld [vmem:[#allocation4 + $0x308] sm:$0xff]  ;;  %v1544_v45 = vld [vmem:[#allocation4 + $0x330] sm:$0xff] }
 0x4fb   :  { %v2623_v31 = vpack.c.bf16 %v1539_v4, %v1538_v28 }
 0x4fc   :  { %v1194_v16 = vsub.f32 %v1189_v5, %v1193_v6  ;;  %v1213_v60 = vmul.f32 %v1198_v49, %v1116_v54  ;;  %v1199_v57 = vmul.f32 %v1198_v49, %v3151_v20  ;;  %v1200_v55 = vmul.f32 %v3147_v15, %v1198_v49  ;;  %v1545_v5 = vld [vmem:[#allocation4 + $0x338] sm:$0xff] }
 0x4fd   :  { %v1201_v12 = vmul.f32 %v1198_v49, %v3159_v23  ;;  %v1202_v21 = vmul.f32 %v3157_v51, %v1198_v49  ;;  %v1203_v58 = vmul.f32 %v1198_v49, %v3169_v37  ;;  %v1204_v24 = vmul.f32 %v3166_v27, %v1198_v49  ;;  %2624 = vmatprep.subr.bf16.mxu0 %v2623_v31 }
 0x4fe   :  { %v1218_v26 = vrot.slane %v1194_v16, %v2968_v38  ;;  %v1205_v62 = vmul.f32 %v1198_v49, %v3179_v18  ;;  %v1206_v0 = vmul.f32 %v3176_v10, %v1198_v49  ;;  %v1207_v42 = vmul.f32 %v1198_v49, %v3189_v44  ;;  %2655 = vmatprep.subr.bf16.mxu1 %v2623_v31  ;;  %v1547_v16 = vld [vmem:[#allocation4 + $0x348] sm:$0xff] }
 0x4ff   :  { %v1208_v20 = vmul.f32 %v3186_v1, %v1198_v49  ;;  %v1209_v48 = vmul.f32 %v1198_v49, %v1096_v56  ;;  %v1210_v15 = vmul.f32 %v3196_v50, %v1198_v49  ;;  %v1211_v23 = vmul.f32 %v1198_v49, %v1106_v63  ;;  %2626 = vmatpush3.bf16.msra.mxu0 %v2623_v31 }
 0x500   :  { %v1219_v7 = vadd.f32 %v1218_v26, %v1199_v57  ;;  %v1220_v51 = vadd.f32 %v1218_v26, %v1200_v55  ;;  %v1221_v8 = vadd.f32 %v1218_v26, %v1201_v12  ;;  %v1222_v37 = vadd.f32 %v1218_v26, %v1202_v21  ;;  %2628 = vmatprep.subr.bf16.mxu0 %v2627_v32  ;;  %v1548_v57 = vld [vmem:[#allocation4 + $0x350] sm:$0xff]  ;;  %v1549_v55 = vld [vmem:[#allocation4 + $0x358] sm:$0xff]  ;;  %v1550_v12 = vld [vmem:[#allocation4 + $0x360] sm:$0xff] }
 0x501   :  { %v1223_v47 = vadd.f32 %v1218_v26, %v1203_v58  ;;  %v1224_v27 = vadd.f32 %v1218_v26, %v1204_v24  ;;  %v1225_v54 = vadd.f32 %v1218_v26, %v1205_v62  ;;  %v1226_v61 = vadd.f32 %v1218_v26, %v1206_v0  ;;  %v1551_v58 = vld [vmem:[#allocation4 + $0x368] sm:$0xff]  ;;  %v1553_v62 = vld [vmem:[#allocation4 + $0x378] sm:$0xff] }
 0x502   :  { %v1235_v33 = vmax.f32 %v1219_v7, 0.0  ;;  %v1236_v18 = vmax.f32 %v1220_v51, 0.0  ;;  %v1237_v41 = vmax.f32 %v1221_v8, 0.0  ;;  %v1227_v10 = vadd.f32 %v1218_v26, %v1207_v42 }
 0x503   :  { %v1228_v44 = vadd.f32 %v1218_v26, %v1208_v20  ;;  %v1229_v11 = vadd.f32 %v1218_v26, %v1209_v48  ;;  %v1230_v1 = vadd.f32 %v1218_v26, %v1210_v15  ;;  %v1231_v56 = vadd.f32 %v1218_v26, %v1211_v23  ;;  %2630 = vmatpush3.bf16.msra.mxu0 %v2627_v32 }
 0x504   :  { %2383 = vmatprep.mubr.f32.mxu1 %v1235_v33  ;;  %v1212_v50 = vmul.f32 %v3201_v59, %v1198_v49  ;;  %v1233_v63 = vadd.f32 %v1218_v26, %v1213_v60  ;;  %v1214_v52 = vmul.f32 %v3206_v35, %v1198_v49  ;;  %v1238_v13 = vmax.f32 %v1222_v37, 0.0  ;;  %2632 = vmatprep.subr.bf16.mxu0 %v2631_v39  ;;  %v1546_v49 = vld [vmem:[#allocation4 + $0x340] sm:$0xff] }
 0x505   :  { %2384 = vmatmul.mubr.f32.vlgmr.msra.gmra.mrb[32].mxu1 %v1236_v18  ;;  %v1239_v43 = vmax.f32 %v1223_v47, 0.0  ;;  %v1240_v40 = vmax.f32 %v1224_v27, 0.0  ;;  %v1241_v46 = vmax.f32 %v1225_v54, 0.0  ;;  %v1242_v22 = vmax.f32 %v1226_v61, 0.0 }
 0x506   :  { %2386 = vmatprep.mubr.f32.mxu1 %v1237_v41  ;;  %v1232_v17 = vadd.f32 %v1218_v26, %v1212_v50  ;;  %v1234_v19 = vadd.f32 %v1218_v26, %v1214_v52  ;;  %v1243_v14 = vmax.f32 %v1227_v10, 0.0  ;;  %v1244_v3 = vmax.f32 %v1228_v44, 0.0  ;;  %2663 = vmatpush3.bf16.msra.mxu1 %v2623_v31  ;;  %v1552_v26 = vld [vmem:[#allocation4 + $0x370] sm:$0xff] }
 0x507   :  { %v1245_v59 = vmax.f32 %v1229_v11, 0.0  ;;  %v1246_v35 = vmax.f32 %v1230_v1, 0.0  ;;  %v1247_v53 = vmax.f32 %v1231_v56, 0.0  ;;  %v1249_v29 = vmax.f32 %v1233_v63, 0.0  ;;  %2656 = vmatprep.subr.bf16.mxu1 %v2627_v32  ;;  %2634 = vmatpush3.bf16.msra.mxu0 %v2631_v39 }
 0x508   :  { %v1248_v25 = vmax.f32 %v1232_v17, 0.0  ;;  %v1250_v30 = vmax.f32 %v1234_v19, 0.0  ;;  %v2635_v6 = vpack.c.bf16 %v1545_v5, %v1544_v45  ;;  %v2639_v60 = vpack.c.bf16 %v1547_v16, %v1546_v49 }
 0x509   :  { %2387 = vmatmul.mubr.f32.gmra.mrb[34].mxu1 %v1238_v13  ;;  %v2643_v21 = vpack.c.bf16 %v1549_v55, %v1548_v57  ;;  %v2647_v24 = vpack.c.bf16 %v1551_v58, %v1550_v12  ;;  %v2651_v0 = vpack.c.bf16 %v1553_v62, %v1552_v26 }
 0x50a   :  { %2389 = vmatprep.mubr.f32.mxu1 %v1239_v43  ;;  %2664 = vmatpush3.bf16.msra.mxu1 %v2627_v32 }
 0x50b   :  { %2657 = vmatprep.subr.bf16.mxu1 %v2631_v39  ;;  %2636 = vmatprep.subr.bf16.mxu0 %v2635_v6 }
 0x50c   :  { %2638 = vmatpush3.bf16.msra.mxu0 %v2635_v6 }
 0x50d   :  { %2390 = vmatmul.mubr.f32.gmra.mrb[36].mxu1 %v1240_v40  ;;  %2640 = vmatprep.subr.bf16.mxu0 %v2639_v60 }
 0x50e   :  { %2392 = vmatprep.mubr.f32.mxu1 %v1241_v46  ;;  %2665 = vmatpush3.bf16.msra.mxu1 %v2631_v39 }
 0x50f   :  { %2658 = vmatprep.subr.bf16.mxu1 %v2635_v6 }
 0x510   :  { %2642 = vmatpush3.bf16.msra.mxu0 %v2639_v60 }
 0x511   :  { %2393 = vmatmul.mubr.f32.gmra.mrb[38].mxu1 %v1242_v22  ;;  %2644 = vmatprep.subr.bf16.mxu0 %v2643_v21 }
 0x512   :  { %2395 = vmatprep.mubr.f32.mxu1 %v1243_v14  ;;  %2666 = vmatpush3.bf16.msra.mxu1 %v2635_v6 }
 0x513   :  { %2659 = vmatprep.subr.bf16.mxu1 %v2639_v60 }
 0x514   :  { %2646 = vmatpush3.bf16.msra.mxu0 %v2643_v21 }
 0x515   :  { %2396 = vmatmul.mubr.f32.gmra.mrb[40].mxu1 %v1244_v3  ;;  %2648 = vmatprep.subr.bf16.mxu0 %v2647_v24 }
 0x516   :  { %2398 = vmatprep.mubr.f32.mxu1 %v1245_v59  ;;  %2667 = vmatpush3.bf16.msra.mxu1 %v2639_v60 }
 0x517   :  { %2660 = vmatprep.subr.bf16.mxu1 %v2643_v21 }
 0x518   :  { %2650 = vmatpush3.bf16.msra.mxu0 %v2647_v24 }
 0x519   :  { %2399 = vmatmul.mubr.f32.gmra.mrb[42].mxu1 %v1246_v35  ;;  %2652 = vmatprep.subr.bf16.mxu0 %v2651_v0 }
 0x51a   :  { %2401 = vmatprep.mubr.f32.mxu1 %v1247_v53  ;;  %2668 = vmatpush3.bf16.msra.mxu1 %v2643_v21 }
 0x51b   :  { %2661 = vmatprep.subr.bf16.mxu1 %v2647_v24 }
 0x51c   :  { %2654 = vmatpush3.bf16.msra.mxu0 %v2651_v0 }
 0x51d   :  { %2402 = vmatmul.mubr.f32.gmra.mrb[44].mxu1 %v1248_v25 }
 0x51e   :  { %2404 = vmatprep.mubr.f32.mxu1 %v1249_v29  ;;  %2669 = vmatpush3.bf16.msra.mxu1 %v2647_v24 }
 0x51f   :  { %2662 = vmatprep.subr.bf16.mxu1 %v2651_v0 }
 0x521   :  { %2405 = vmatmul.mubr.f32.gmra.mrb[46].mxu1 %v1250_v30 }
 0x522   :  { %2670 = vmatpush3.bf16.msra.mxu1 %v2651_v0 }
 0x5d8   :  { %v3227_v42 = vpop.f32.mrb[32].mxu1 }
 0x5d9   :  { %v1434_v20 = vmul.f32 %v3227_v42, %v3227_v42  ;;  %v3231_v48 = vpop.f32.mrb[33].mxu1 }
 0x5da   :  { %v1412_v15 = vadd.f32 %v3227_v42, %v3231_v48  ;;  %v1433_v23 = vmul.f32 %v3231_v48, %v3231_v48 }
 0x5dc   :  { %v1449_v7 = vadd.f32 %v1434_v20, %v1433_v23  ;;  %v3237_v51 = vpop.f32.mrb[34].mxu1 }
 0x5dd   :  { %v3239_v8 = vpop.f32.mrb[35].mxu1  ;;  %v1436_v27 = vmul.f32 %v3237_v51, %v3237_v51 }
 0x5de   :  { %v1413_v37 = vadd.f32 %v1412_v15, %v3239_v8  ;;  %v1435_v47 = vmul.f32 %v3239_v8, %v3239_v8 }
 0x5e0   :  { %v1450_v54 = vadd.f32 %v1449_v7, %v1435_v47  ;;  %v3246_v61 = vpop.f32.mrb[36].mxu1  ;;  %v1414_v33 = vadd.f32 %v3237_v51, %v1413_v37 }
 0x5e1   :  { %v3249_v18 = vpop.f32.mrb[37].mxu1  ;;  %v1438_v11 = vmul.f32 %v3246_v61, %v3246_v61 }
 0x5e2   :  { %v1415_v41 = vadd.f32 %v1414_v33, %v3249_v18  ;;  %v1437_v10 = vmul.f32 %v3249_v18, %v3249_v18  ;;  %v1451_v44 = vadd.f32 %v1450_v54, %v1436_v27 }
 0x5e4   :  { %v1452_v1 = vadd.f32 %v1451_v44, %v1437_v10  ;;  %v3256_v56 = vpop.f32.mrb[38].mxu1  ;;  %v1416_v50 = vadd.f32 %v3246_v61, %v1415_v41 }
 0x5e5   :  { %v3259_v63 = vpop.f32.mrb[39].mxu1  ;;  %v1440_v19 = vmul.f32 %v3256_v56, %v3256_v56 }
 0x5e6   :  { %v1417_v52 = vadd.f32 %v1416_v50, %v3259_v63  ;;  %v1439_v13 = vmul.f32 %v3259_v63, %v3259_v63  ;;  %v1453_v17 = vadd.f32 %v1452_v1, %v1438_v11 }
 0x5e8   :  { %v1454_v43 = vadd.f32 %v1453_v17, %v1439_v13  ;;  %v3266_v40 = vpop.f32.mrb[40].mxu1  ;;  %v1418_v46 = vadd.f32 %v3256_v56, %v1417_v52  ;;  %v1475_v17 = vld [vmem:[#allocation6 + $0x8] sm:$0x1] }
 0x5e9   :  { %v1373_v22 = vpop.f32.mrb[41].mxu1  ;;  %v1442_v35 = vmul.f32 %v3266_v40, %v3266_v40 }
 0x5ea   :  { %v1419_v14 = vadd.f32 %v1418_v46, %v1373_v22  ;;  %v1441_v3 = vmul.f32 %v1373_v22, %v1373_v22  ;;  %v1455_v59 = vadd.f32 %v1454_v43, %v1440_v19  ;;  %v1476_v46 = vld [vmem:[#allocation6 + $0x9] sm:$0x1] }
 0x5ec   :  { %v1456_v53 = vadd.f32 %v1455_v59, %v1441_v3  ;;  %v2400_v25 = vpop.f32.mrb[42].mxu1  ;;  %v1420_v29 = vadd.f32 %v3266_v40, %v1419_v14 }
 0x5ed   :  { %v1383_v30 = vpop.f32.mrb[43].mxu1  ;;  %v1444_v2 = vmul.f32 %v2400_v25, %v2400_v25 }
 0x5ee   :  { %v1421_v28 = vadd.f32 %v1420_v29, %v1383_v30  ;;  %v1443_v4 = vmul.f32 %v1383_v30, %v1383_v30  ;;  %v1457_v31 = vadd.f32 %v1456_v53, %v1442_v35 }
 0x5f0   :  { %v1458_v9 = vadd.f32 %v1457_v31, %v1443_v4  ;;  %v2403_v32 = vpop.f32.mrb[44].mxu1  ;;  %v1422_v34 = vadd.f32 %v2400_v25, %v1421_v28 }
 0x5f1   :  { %v1393_v36 = vpop.f32.mrb[45].mxu1  ;;  %v1446_v6 = vmul.f32 %v2403_v32, %v2403_v32 }
 0x5f2   :  { %v1423_v39 = vadd.f32 %v1422_v34, %v1393_v36  ;;  %v1445_v45 = vmul.f32 %v1393_v36, %v1393_v36  ;;  %v1459_v5 = vadd.f32 %v1458_v9, %v1444_v2 }
 0x5f4   :  { %v1460_v49 = vadd.f32 %v1459_v5, %v1445_v45  ;;  %v3272_v16 = vpop.f32.mrb[46].mxu1  ;;  %v1424_v60 = vadd.f32 %v2403_v32, %v1423_v39 }
 0x5f5   :  { %v1403_v57 = vpop.f32.mrb[47].mxu1  ;;  %v1448_v58 = vmul.f32 %v3272_v16, %v3272_v16 }
 0x5f6   :  { %v1425_v55 = vadd.f32 %v1424_v60, %v1403_v57  ;;  %v1447_v12 = vmul.f32 %v1403_v57, %v1403_v57  ;;  %v1461_v21 = vadd.f32 %v1460_v49, %v1446_v6 }
 0x5f8   :  { %v1426_v24 = vadd.f32 %v3272_v16, %v1425_v55  ;;  %v1462_v26 = vadd.f32 %v1461_v21, %v1447_v12 }
 0x5fa   :  { %v1427_v62 = vrot.slane %v1426_v24, 4  ;;  %v1463_v0 = vadd.f32 %v1462_v26, %v1448_v58 }
 0x5fc   :  { %v1428_v20 = vadd.f32 %v1427_v62, %v1426_v24  ;;  %v1464_v15 = vrot.slane %v1463_v0, 4 }
 0x5fe   :  { %v1429_v23 = vrot.slane %v1428_v20, 2  ;;  %v1465_v7 = vadd.f32 %v1464_v15, %v1463_v0 }
 0x600   :  { %v1430_v37 = vadd.f32 %v1429_v23, %v1428_v20  ;;  %v1466_v47 = vrot.slane %v1465_v7, 2 }
 0x602   :  { %v1431_v27 = vrot.slane %v1430_v37, 1  ;;  %v1467_v54 = vadd.f32 %v1466_v47, %v1465_v7 }
 0x604   :  { %v1432_v33 = vadd.f32 %v1431_v27, %v1430_v37  ;;  %v1468_v41 = vrot.slane %v1467_v54, 1 }
 0x606   :  { %v1469_v10 = vadd.f32 %v1468_v41, %v1467_v54  ;;  %v1470_v44 = vmul.f32 0.0078125, %v1432_v33 }
 0x608   :  { %v1471_v11 = vmul.f32 0.0078125, %v1469_v10  ;;  %v1472_v1 = vmul.f32 %v1470_v44, %v1470_v44 }
 0x60a   :  { %v1473_v50 = vsub.f32 %v1471_v11, %v1472_v1 }
 0x60c   :  { %v1474_v52 = vmax.f32 %v1473_v50, 0.0 }
 0x60e   :  { %v1477_v13 = vadd.f32 1e-05, %v1474_v52 }
 0x610   :  { %2686 = vrsqrt.f32 %v1477_v13 }
 0x61a   :  { %v2687_v19 = vpop.eup %2686 }
 0x61b   :  { %v1479_v43 = vmul.f32 %v2687_v19, %v1475_v17 }
 0x61d   :  { %v1480_v14 = vmul.f32 %v1479_v43, %v1470_v44  ;;  %v1485_v3 = vrot.slane %v1479_v43, %v2968_v38 }
 0x61f   :  { %v1481_v59 = vsub.f32 %v1476_v46, %v1480_v14  ;;  %v1500_v35 = vmul.f32 %v1485_v3, %v1403_v57  ;;  %v1486_v53 = vmul.f32 %v1485_v3, %v3231_v48  ;;  %v1494_v29 = vmul.f32 %v1485_v3, %v1373_v22 }
 0x620   :  { %v1487_v28 = vmul.f32 %v3227_v42, %v1485_v3  ;;  %v1495_v4 = vmul.f32 %v3266_v40, %v1485_v3  ;;  %v1488_v31 = vmul.f32 %v1485_v3, %v3239_v8  ;;  %v1496_v2 = vmul.f32 %v1485_v3, %v1383_v30 }
 0x621   :  { %v1505_v9 = vrot.slane %v1481_v59, %v2968_v38  ;;  %v1489_v34 = vmul.f32 %v3237_v51, %v1485_v3  ;;  %v1497_v39 = vmul.f32 %v2400_v25, %v1485_v3  ;;  %v1490_v45 = vmul.f32 %v1485_v3, %v3249_v18 }
 0x622   :  { %v1498_v5 = vmul.f32 %v1485_v3, %v1393_v36  ;;  %v1491_v6 = vmul.f32 %v3246_v61, %v1485_v3  ;;  %v1499_v49 = vmul.f32 %v2403_v32, %v1485_v3  ;;  %v1492_v48 = vmul.f32 %v1485_v3, %v3259_v63 }
 0x623   :  { %v1506_v22 = vadd.f32 %v1505_v9, %v1486_v53  ;;  %v1514_v42 = vadd.f32 %v1505_v9, %v1494_v29  ;;  %v1507_v60 = vadd.f32 %v1505_v9, %v1487_v28  ;;  %v1515_v40 = vadd.f32 %v1505_v9, %v1495_v4 }
 0x624   :  { %v1508_v57 = vadd.f32 %v1505_v9, %v1488_v31  ;;  %v1516_v8 = vadd.f32 %v1505_v9, %v1496_v2  ;;  %v1509_v30 = vadd.f32 %v1505_v9, %v1489_v34  ;;  %v1517_v55 = vadd.f32 %v1505_v9, %v1497_v39 }
 0x625   :  { %v1522_v12 = vmax.f32 %v1506_v22, 0.0  ;;  %v1530_v21 = vmax.f32 %v1514_v42, 0.0  ;;  %v1523_v51 = vmax.f32 %v1507_v60, 0.0  ;;  %v1531_v25 = vmax.f32 %v1515_v40, 0.0 }
 0x626   :  { %v1524_v58 = vmax.f32 %v1508_v57, 0.0  ;;  %v1532_v18 = vmax.f32 %v1516_v8, 0.0  ;;  %v1510_v61 = vadd.f32 %v1505_v9, %v1490_v45  ;;  %v1518_v32 = vadd.f32 %v1505_v9, %v1498_v5 }
 0x627   :  { %2439 = vmatprep.mubr.f32.mxu0 %v1522_v12  ;;  %2451 = vmatprep.mubr.f32.mxu1 %v1530_v21  ;;  %v1511_v36 = vadd.f32 %v1505_v9, %v1491_v6  ;;  %v1519_v63 = vadd.f32 %v1505_v9, %v1499_v49  ;;  %v1512_v24 = vadd.f32 %v1505_v9, %v1492_v48  ;;  %v1525_v0 = vmax.f32 %v1509_v30, 0.0 }
 0x628   :  { %2440 = vmatmul.mubr.f32.vlgmr.msra.gmra.mrb[48].mxu0 %v1523_v51  ;;  %2452 = vmatmul.mubr.f32.vlgmr.msra.gmra.mrb[48].mxu1 %v1531_v25  ;;  %v1520_v26 = vadd.f32 %v1505_v9, %v1500_v35  ;;  %v1493_v62 = vmul.f32 %v3256_v56, %v1485_v3  ;;  %v1533_v20 = vmax.f32 %v1517_v55, 0.0  ;;  %v1501_v15 = vmul.f32 %v3272_v16, %v1485_v3 }
 0x629   :  { %2442 = vmatprep.mubr.f32.mxu0 %v1524_v58  ;;  %2454 = vmatprep.mubr.f32.mxu1 %v1532_v18  ;;  %v1526_v23 = vmax.f32 %v1510_v61, 0.0  ;;  %v1534_v7 = vmax.f32 %v1518_v32, 0.0  ;;  %v1527_v27 = vmax.f32 %v1511_v36, 0.0  ;;  %v1535_v54 = vmax.f32 %v1519_v63, 0.0 }
 0x62a   :  { %v1513_v37 = vadd.f32 %v1505_v9, %v1493_v62  ;;  %v1521_v47 = vadd.f32 %v1505_v9, %v1501_v15  ;;  %v1528_v33 = vmax.f32 %v1512_v24, 0.0  ;;  %v1536_v41 = vmax.f32 %v1520_v26, 0.0 }
 0x62c   :  { %2443 = vmatmul.mubr.f32.gmra.mrb[50].mxu0 %v1525_v0  ;;  %2455 = vmatmul.mubr.f32.gmra.mrb[50].mxu1 %v1533_v20  ;;  %v1529_v56 = vmax.f32 %v1513_v37, 0.0  ;;  %v1537_v10 = vmax.f32 %v1521_v47, 0.0 }
 0x62d   :  { %2445 = vmatprep.mubr.f32.mxu0 %v1526_v23  ;;  %2457 = vmatprep.mubr.f32.mxu1 %v1534_v7 }
 0x630   :  { %2446 = vmatmul.mubr.f32.gmra.mrb[52].mxu0 %v1527_v27  ;;  %2458 = vmatmul.mubr.f32.gmra.mrb[52].mxu1 %v1535_v54 }
 0x631   :  { %2448 = vmatprep.mubr.f32.mxu0 %v1528_v33  ;;  %2460 = vmatprep.mubr.f32.mxu1 %v1536_v41 }
 0x634   :  { %2449 = vmatmul.mubr.f32.gmra.mrb[54].mxu0 %v1529_v56  ;;  %2461 = vmatmul.mubr.f32.gmra.mrb[54].mxu1 %v1537_v10 }
 0x6fb   :  { %v3289_v16 = vpop.f32.mrb[48].mxu0  ;;  %v3291_v44 = vpop.f32.mrb[48].mxu1 }
 0x6fc   :  { %v1721_v11 = vmul.f32 %v3289_v16, %v3289_v16  ;;  %v3295_v1 = vpop.f32.mrb[49].mxu0  ;;  %v3297_v50 = vpop.f32.mrb[49].mxu1  ;;  %v1729_v25 = vmul.f32 %v3291_v44, %v3291_v44 }
 0x6fd   :  { %v1699_v52 = vadd.f32 %v3289_v16, %v3295_v1  ;;  %v1720_v13 = vmul.f32 %v3295_v1, %v3295_v1  ;;  %v1728_v12 = vmul.f32 %v3297_v50, %v3297_v50 }
 0x6ff   :  { %v1736_v17 = vadd.f32 %v1721_v11, %v1720_v13  ;;  %v3303_v19 = vpop.f32.mrb[50].mxu0  ;;  %v3305_v43 = vpop.f32.mrb[50].mxu1 }
 0x700   :  { %v3307_v46 = vpop.f32.mrb[51].mxu0  ;;  %v3309_v14 = vpop.f32.mrb[51].mxu1  ;;  %v1723_v35 = vmul.f32 %v3303_v19, %v3303_v19  ;;  %v1731_v63 = vmul.f32 %v3305_v43, %v3305_v43 }
 0x701   :  { %v1700_v3 = vadd.f32 %v1699_v52, %v3307_v46  ;;  %v1722_v59 = vmul.f32 %v3307_v46, %v3307_v46  ;;  %v1730_v61 = vmul.f32 %v3309_v14, %v3309_v14 }
 0x703   :  { %v1737_v53 = vadd.f32 %v1736_v17, %v1722_v59  ;;  %v3316_v29 = vpop.f32.mrb[52].mxu0  ;;  %v3318_v28 = vpop.f32.mrb[52].mxu1  ;;  %v1701_v4 = vadd.f32 %v3303_v19, %v1700_v3 }
 0x704   :  { %v3321_v31 = vpop.f32.mrb[53].mxu0  ;;  %v3323_v2 = vpop.f32.mrb[53].mxu1  ;;  %v1725_v45 = vmul.f32 %v3316_v29, %v3316_v29  ;;  %v1733_v15 = vmul.f32 %v3318_v28, %v3318_v28 }
 0x705   :  { %v1702_v9 = vadd.f32 %v1701_v4, %v3321_v31  ;;  %v1724_v34 = vmul.f32 %v3321_v31, %v3321_v31  ;;  %v1738_v39 = vadd.f32 %v1737_v53, %v1723_v35  ;;  %v1732_v62 = vmul.f32 %v3323_v2, %v3323_v2 }
 0x707   :  { %v1739_v5 = vadd.f32 %v1738_v39, %v1724_v34  ;;  %v3330_v6 = vpop.f32.mrb[54].mxu0  ;;  %v3332_v49 = vpop.f32.mrb[54].mxu1  ;;  %v1703_v48 = vadd.f32 %v3316_v29, %v1702_v9 }
 0x708   :  { %v3335_v22 = vpop.f32.mrb[55].mxu0  ;;  %v3337_v42 = vpop.f32.mrb[55].mxu1  ;;  %v1727_v8 = vmul.f32 %v3330_v6, %v3330_v6  ;;  %v1735_v54 = vmul.f32 %v3332_v49, %v3332_v49 }
 0x709   :  { %v1704_v60 = vadd.f32 %v1703_v48, %v3335_v22  ;;  %v1726_v40 = vmul.f32 %v3335_v22, %v3335_v22  ;;  %v1740_v57 = vadd.f32 %v1739_v5, %v1725_v45  ;;  %v1734_v47 = vmul.f32 %v3337_v42, %v3337_v42 }
 0x70b   :  { %v1705_v30 = vadd.f32 %v3330_v6, %v1704_v60  ;;  %v1741_v55 = vadd.f32 %v1740_v57, %v1726_v40  ;;  %v1762_v57 = vld [vmem:[#allocation6 + $0xa] sm:$0x1] }
 0x70d   :  { %v1706_v21 = vadd.f32 %v1705_v30, %v3297_v50  ;;  %v1742_v51 = vadd.f32 %v1741_v55, %v1727_v8  ;;  %v1763_v55 = vld [vmem:[#allocation6 + $0xb] sm:$0x1] }
 0x70f   :  { %v1707_v58 = vadd.f32 %v3291_v44, %v1706_v21  ;;  %v1743_v18 = vadd.f32 %v1742_v51, %v1728_v12 }
 0x711   :  { %v1744_v32 = vadd.f32 %v1743_v18, %v1729_v25  ;;  %v1708_v36 = vadd.f32 %v1707_v58, %v3309_v14 }
 0x713   :  { %v1709_v24 = vadd.f32 %v3305_v43, %v1708_v36  ;;  %v1745_v26 = vadd.f32 %v1744_v32, %v1730_v61 }
 0x715   :  { %v1710_v0 = vadd.f32 %v1709_v24, %v3323_v2  ;;  %v1746_v20 = vadd.f32 %v1745_v26, %v1731_v63 }
 0x717   :  { %v1711_v23 = vadd.f32 %v3318_v28, %v1710_v0  ;;  %v1747_v7 = vadd.f32 %v1746_v20, %v1732_v62 }
 0x719   :  { %v1712_v37 = vadd.f32 %v1711_v23, %v3337_v42  ;;  %v1748_v27 = vadd.f32 %v1747_v7, %v1733_v15 }
 0x71b   :  { %v1713_v33 = vadd.f32 %v3332_v49, %v1712_v37  ;;  %v1749_v41 = vadd.f32 %v1748_v27, %v1734_v47 }
 0x71d   :  { %v1714_v56 = vrot.slane %v1713_v33, 4  ;;  %v1750_v10 = vadd.f32 %v1749_v41, %v1735_v54 }
 0x71f   :  { %v1715_v11 = vadd.f32 %v1714_v56, %v1713_v33  ;;  %v1751_v52 = vrot.slane %v1750_v10, 4 }
 0x721   :  { %v1716_v13 = vrot.slane %v1715_v11, 2  ;;  %v1752_v17 = vadd.f32 %v1751_v52, %v1750_v10 }
 0x723   :  { %v1717_v3 = vadd.f32 %v1716_v13, %v1715_v11  ;;  %v1753_v59 = vrot.slane %v1752_v17, 2 }
 0x725   :  { %v1718_v35 = vrot.slane %v1717_v3, 1  ;;  %v1754_v53 = vadd.f32 %v1753_v59, %v1752_v17 }
 0x727   :  { %v1719_v4 = vadd.f32 %v1718_v35, %v1717_v3  ;;  %v1755_v9 = vrot.slane %v1754_v53, 1 }
 0x729   :  { %v1756_v34 = vadd.f32 %v1755_v9, %v1754_v53  ;;  %v1757_v39 = vmul.f32 0.0078125, %v1719_v4 }
 0x72b   :  { %v1758_v45 = vmul.f32 0.0078125, %v1756_v34  ;;  %v1759_v5 = vmul.f32 %v1757_v39, %v1757_v39 }
 0x72d   :  { %v1760_v48 = vsub.f32 %v1758_v45, %v1759_v5 }
 0x72f   :  { %v1761_v60 = vmax.f32 %v1760_v48, 0.0 }
 0x731   :  { %v1764_v40 = vadd.f32 1e-05, %v1761_v60 }
 0x733   :  { %2688 = vrsqrt.f32 %v1764_v40 }
 0x73d   :  { %v2689_v8 = vpop.eup %2688 }
 0x73e   :  { %v1766_v30 = vmul.f32 %v2689_v8, %v1762_v57 }
 0x740   :  { %v1767_v12 = vmul.f32 %v1766_v30, %v1757_v39  ;;  %v1772_v21 = vrot.slane %v1766_v30, %v2968_v38 }
 0x742   :  { %v1768_v51 = vsub.f32 %v1763_v55, %v1767_v12  ;;  %v1773_v25 = vmul.f32 %v1772_v21, %v3295_v1  ;;  %v1774_v58 = vmul.f32 %v3289_v16, %v1772_v21  ;;  %v1775_v18 = vmul.f32 %v1772_v21, %v3307_v46 }
 0x743   :  { %v1776_v61 = vmul.f32 %v3303_v19, %v1772_v21  ;;  %v1777_v32 = vmul.f32 %v1772_v21, %v3321_v31  ;;  %v1778_v36 = vmul.f32 %v3316_v29, %v1772_v21  ;;  %v1779_v63 = vmul.f32 %v1772_v21, %v3335_v22 }
 0x744   :  { %v1780_v24 = vmul.f32 %v3330_v6, %v1772_v21  ;;  %v1781_v26 = vmul.f32 %v1772_v21, %v3297_v50  ;;  %v1782_v62 = vmul.f32 %v3291_v44, %v1772_v21  ;;  %v1783_v1 = vmul.f32 %v1772_v21, %v3309_v14 }
 0x745   :  { %v1784_v16 = vmul.f32 %v3305_v43, %v1772_v21  ;;  %v1785_v46 = vmul.f32 %v1772_v21, %v3323_v2  ;;  %v1786_v19 = vmul.f32 %v3318_v28, %v1772_v21  ;;  %v1787_v31 = vmul.f32 %v1772_v21, %v3337_v42 }
 0x746   :  { %v1788_v29 = vmul.f32 %v3332_v49, %v1772_v21  ;;  %v1792_v22 = vrot.slane %v1768_v51, %v2968_v38 }
 0x748   :  { %v1793_v0 = vadd.f32 %v1792_v22, %v1773_v25  ;;  %v1794_v6 = vadd.f32 %v1792_v22, %v1774_v58  ;;  %v1795_v20 = vadd.f32 %v1792_v22, %v1775_v18  ;;  %v1796_v50 = vadd.f32 %v1792_v22, %v1776_v61 }
 0x749   :  { %v1797_v15 = vadd.f32 %v1792_v22, %v1777_v32  ;;  %v1798_v44 = vadd.f32 %v1792_v22, %v1778_v36  ;;  %v1799_v23 = vadd.f32 %v1792_v22, %v1779_v63  ;;  %v1800_v14 = vadd.f32 %v1792_v22, %v1780_v24 }
 0x74a   :  { %v1801_v7 = vadd.f32 %v1792_v22, %v1781_v26  ;;  %v1802_v43 = vadd.f32 %v1792_v22, %v1782_v62  ;;  %v1803_v37 = vadd.f32 %v1792_v22, %v1783_v1  ;;  %v1804_v2 = vadd.f32 %v1792_v22, %v1784_v16 }
 0x74b   :  { %v1805_v47 = vadd.f32 %v1792_v22, %v1785_v46  ;;  %v1806_v28 = vadd.f32 %v1792_v22, %v1786_v19  ;;  %v1807_v27 = vadd.f32 %v1792_v22, %v1787_v31  ;;  %v1808_v42 = vadd.f32 %v1792_v22, %v1788_v29 }
 0x74c   :  { %v1927_v54 = vmul.f32 -1.442695, %v1793_v0  ;;  %v1928_v49 = vmul.f32 -1.442695, %v1794_v6  ;;  %v1929_v33 = vmul.f32 -1.442695, %v1795_v20 }
 0x74d   :  { %v1930_v38 = vmul.f32 -1.442695, %v1796_v50  ;;  %v1931_v41 = vmul.f32 -1.442695, %v1797_v15  ;;  %v1932_v56 = vmul.f32 -1.442695, %v1798_v44 }
 0x74e   :  { %2690 = vpow2.f32 %v1927_v54  ;;  %v1933_v10 = vmul.f32 -1.442695, %v1799_v23  ;;  %v1934_v11 = vmul.f32 -1.442695, %v1800_v14  ;;  %v1935_v52 = vmul.f32 -1.442695, %v1801_v7 }
 0x74f   :  { %2692 = vpow2.f32 %v1928_v49  ;;  %v1936_v13 = vmul.f32 -1.442695, %v1802_v43  ;;  %v1937_v17 = vmul.f32 -1.442695, %v1803_v37  ;;  %v1938_v3 = vmul.f32 -1.442695, %v1804_v2 }
 0x750   :  { %2694 = vpow2.f32 %v1929_v33  ;;  %v1939_v59 = vmul.f32 -1.442695, %v1805_v47  ;;  %v1940_v35 = vmul.f32 -1.442695, %v1806_v28  ;;  %v1941_v4 = vmul.f32 -1.442695, %v1807_v27 }
 0x751   :  { %2696 = vpow2.f32 %v1930_v38  ;;  %v1942_v34 = vmul.f32 -1.442695, %v1808_v42 }
 0x752   :  { %2698 = vpow2.f32 %v1931_v41 }
 0x753   :  { %2700 = vpow2.f32 %v1932_v56 }
 0x754   :  { %2702 = vpow2.f32 %v1933_v10 }
 0x755   :  { %2704 = vpow2.f32 %v1934_v11 }
 0x756   :  { %2706 = vpow2.f32 %v1935_v52 }
 0x757   :  { %2708 = vpow2.f32 %v1936_v13 }
 0x758   :  { %v2691_v53 = vpop.eup %2690  ;;  %2710 = vpow2.f32 %v1937_v17 }
 0x759   :  { %v2693_v9 = vpop.eup %2692  ;;  %2712 = vpow2.f32 %v1938_v3  ;;  %v1857_v45 = vadd.f32 1.0, %v2691_v53 }
 0x75a   :  { %v2695_v39 = vpop.eup %2694  ;;  %2714 = vpow2.f32 %v1939_v59  ;;  %v1858_v48 = vadd.f32 1.0, %v2693_v9 }
 0x75b   :  { %v2697_v5 = vpop.eup %2696  ;;  %2716 = vpow2.f32 %v1940_v35  ;;  %v1859_v40 = vadd.f32 1.0, %v2695_v39 }
 0x75c   :  { %v2699_v60 = vpop.eup %2698  ;;  %2718 = vpow2.f32 %v1941_v4  ;;  %v1860_v8 = vadd.f32 1.0, %v2697_v5 }
 0x75d   :  { %v2701_v57 = vpop.eup %2700  ;;  %2720 = vpow2.f32 %v1942_v34  ;;  %v1861_v55 = vadd.f32 1.0, %v2699_v60 }
 0x75e   :  { %v2703_v30 = vpop.eup %2702  ;;  %2722 = vrcp.f32 %v1857_v45  ;;  %v1862_v21 = vadd.f32 1.0, %v2701_v57 }
 0x75f   :  { %v2705_v12 = vpop.eup %2704  ;;  %2724 = vrcp.f32 %v1858_v48  ;;  %v1863_v25 = vadd.f32 1.0, %v2703_v30 }
 0x760   :  { %v2707_v51 = vpop.eup %2706  ;;  %2726 = vrcp.f32 %v1859_v40  ;;  %v1864_v18 = vadd.f32 1.0, %v2705_v12 }
 0x761   :  { %v2709_v58 = vpop.eup %2708  ;;  %2728 = vrcp.f32 %v1860_v8  ;;  %v1865_v32 = vadd.f32 1.0, %v2707_v51 }
 0x762   :  { %v2711_v61 = vpop.eup %2710  ;;  %2730 = vrcp.f32 %v1861_v55  ;;  %v1866_v63 = vadd.f32 1.0, %v2709_v58 }
 0x763   :  { %v2713_v36 = vpop.eup %2712  ;;  %2732 = vrcp.f32 %v1862_v21  ;;  %v1867_v26 = vadd.f32 1.0, %v2711_v61 }
 0x764   :  { %v2715_v24 = vpop.eup %2714  ;;  %2734 = vrcp.f32 %v1863_v25  ;;  %v1868_v1 = vadd.f32 1.0, %v2713_v36 }
 0x765   :  { %v2717_v62 = vpop.eup %2716  ;;  %2736 = vrcp.f32 %v1864_v18  ;;  %v1869_v46 = vadd.f32 1.0, %v2715_v24 }
 0x766   :  { %v2719_v16 = vpop.eup %2718  ;;  %2738 = vrcp.f32 %v1865_v32  ;;  %v1870_v31 = vadd.f32 1.0, %v2717_v62 }
 0x767   :  { %v2721_v19 = vpop.eup %2720  ;;  %2740 = vrcp.f32 %v1866_v63  ;;  %v1871_v22 = vadd.f32 1.0, %v2719_v16 }
 0x768   :  { %v2723_v29 = vpop.eup %2722  ;;  %2742 = vrcp.f32 %v1867_v26  ;;  %v1872_v6 = vadd.f32 1.0, %v2721_v19 }
 0x769   :  { %v2725_v0 = vpop.eup %2724  ;;  %2744 = vrcp.f32 %v1868_v1  ;;  %1905 = vst [vmem:[%s3438_s3] sm:$0xff] %v2723_v29 }
 0x76a   :  { %v2727_v20 = vpop.eup %2726  ;;  %2746 = vrcp.f32 %v1869_v46  ;;  %1906 = vst [vmem:[%s3438_s3 + $0x8] sm:$0xff] %v2725_v0 }
 0x76b   :  { %v2729_v50 = vpop.eup %2728  ;;  %2748 = vrcp.f32 %v1870_v31  ;;  %1907 = vst [vmem:[%s3438_s3 + $0x10] sm:$0xff] %v2727_v20 }
 0x76c   :  { %v2731_v15 = vpop.eup %2730  ;;  %2750 = vrcp.f32 %v1871_v22  ;;  %1908 = vst [vmem:[%s3438_s3 + $0x18] sm:$0xff] %v2729_v50 }
 0x76d   :  { %v2733_v44 = vpop.eup %2732  ;;  %2752 = vrcp.f32 %v1872_v6  ;;  %1909 = vst [vmem:[%s3438_s3 + $0x20] sm:$0xff] %v2731_v15 }
 0x76e   :  { %v2735_v23 = vpop.eup %2734  ;;  %1910 = vst [vmem:[%s3438_s3 + $0x28] sm:$0xff] %v2733_v44 }
 0x76f   :  { %v2737_v14 = vpop.eup %2736  ;;  %1911 = vst [vmem:[%s3438_s3 + $0x30] sm:$0xff] %v2735_v23 }
 0x770   :  { %v2739_v7 = vpop.eup %2738  ;;  %1912 = vst [vmem:[%s3438_s3 + $0x38] sm:$0xff] %v2737_v14 }
 0x771   :  { %v2741_v43 = vpop.eup %2740  ;;  %1913 = vst [vmem:[%s3438_s3 + $0x40] sm:$0xff] %v2739_v7 }
 0x772   :  { %v2743_v37 = vpop.eup %2742  ;;  %1914 = vst [vmem:[%s3438_s3 + $0x48] sm:$0xff] %v2741_v43 }
 0x773   :  { %v2745_v2 = vpop.eup %2744  ;;  %1915 = vst [vmem:[%s3438_s3 + $0x50] sm:$0xff] %v2743_v37 }
 0x774   :  { %v2747_v47 = vpop.eup %2746  ;;  %1916 = vst [vmem:[%s3438_s3 + $0x58] sm:$0xff] %v2745_v2 }
 0x775   :  { %v2749_v28 = vpop.eup %2748  ;;  %1917 = vst [vmem:[%s3438_s3 + $0x60] sm:$0xff] %v2747_v47 }
 0x776   :  { %v2751_v27 = vpop.eup %2750  ;;  %1918 = vst [vmem:[%s3438_s3 + $0x68] sm:$0xff] %v2749_v28 }
 0x777   :  { %v2753_v42 = vpop.eup %2752  ;;  %1919 = vst [vmem:[%s3438_s3 + $0x70] sm:$0xff] %v2751_v27 }
 0x778   :  { %1920 = vst [vmem:[%s3438_s3 + $0x78] sm:$0xff] %v2753_v42 }
 0x779   :  { %1925 = vsyncpa [#allocation3], 1 }
 0x77a   :  { %1926 = vsyncpa [#allocation5], 1 }

</bundles_post_ra>
